<compile_context>
chip_gen: v7x
topology: tpu7x:2x2x1
jax: 0.10.0
libtpu: 0.0.40
codegen_flags: <defaults>
</compile_context>

<pallas_src>
import jax
import jax.numpy as jnp
from jax import lax
from jax.experimental import pallas as pl
from jax.experimental.pallas import tpu as pltpu  # noqa: F401  (TPU backend assumed)

# ----- config consistent with the module's forward ---------------------------
VOCAB = 65            # cfg['vocab_size']
VOCAB_PAD = 128       # lane-dense logits width (padded, sliced outside kernel)
C = 32                # cfg['num_embeddings']
BLOCK = 8             # cfg['block_size']
NUM_HEADS = 4         # cfg['head_size'] (number of heads)
HEAD_DIM = C // NUM_HEADS
NUM_LAYERS = 2        # cfg['num_layers']
B = 2                 # batch
T = BLOCK             # sequence length
BT = B * T
EPS = 1e-5            # nn.LayerNorm default
NEG_INF = -1e30       # finite mask value (robust vs -inf)


def _layer_norm(x, g, b):
    mu = jnp.mean(x, axis=-1, keepdims=True)
    var = jnp.mean((x - mu) ** 2, axis=-1, keepdims=True)
    return (x - mu) * lax.rsqrt(var + EPS) * g + b


# ----- single fused kernel: 2 Blocks -> final LN -> lm_head -------------------
def fused_forward_kernel(x_ref, bias_ref,
                         ln1g_ref, ln1b_ref, wq_ref, wk_ref, wv_ref,
                         wproj_ref, bproj_ref, ln2g_ref, ln2b_ref,
                         w1_ref, b1_ref, w2_ref, b2_ref,
                         lnfg_ref, lnfb_ref, wlm_ref, blm_ref,
                         o_ref):
    x = x_ref[...]            # (BT, C)  token+pos embeddings, batch flattened
    bias = bias_ref[...]      # (BT, BT) additive block-diag causal mask

    for li in range(NUM_LAYERS):          # static unroll over layers
        # --- LN1 -> multi-head self-attention -> residual ---
        h1 = _layer_norm(x, ln1g_ref[li], ln1b_ref[li])
        sa = bproj_ref[li]                # (1, C) proj bias seeds the accumulator
        for hi in range(NUM_HEADS):       # static unroll; per-head weights pre-sliced
            qh = jnp.dot(h1, wq_ref[li, hi, :, :], preferred_element_type=jnp.float32)
            kh = jnp.dot(h1, wk_ref[li, hi, :, :], preferred_element_type=jnp.float32)
            vh = jnp.dot(h1, wv_ref[li, hi, :, :], preferred_element_type=jnp.float32)
            # scale C**-0.5 already folded into Wq; mask is additive bias
            s = jnp.dot(qh, kh.T, preferred_element_type=jnp.float32) + bias  # (BT, BT)
            s = s - jnp.max(s, axis=-1, keepdims=True)
            e = jnp.exp(s)
            p = e * pl.reciprocal(jnp.sum(e, axis=-1, keepdims=True), approx=True)
            # TODO(synk): dropout on attention weights omitted (eval-mode identity)
            oh = jnp.dot(p, vh, preferred_element_type=jnp.float32)           # (BT, hd)
            sa = sa + jnp.dot(oh, wproj_ref[li, hi, :, :],
                              preferred_element_type=jnp.float32)             # (BT, C)
        x = x + sa

        # --- LN2 -> FeedForward -> residual ---
        h2 = _layer_norm(x, ln2g_ref[li], ln2b_ref[li])
        f = jnp.dot(h2, w1_ref[li], preferred_element_type=jnp.float32) + b1_ref[li]
        f = jnp.maximum(f, 0.0)
        f = jnp.dot(f, w2_ref[li], preferred_element_type=jnp.float32) + b2_ref[li]
        # TODO(synk): FeedForward dropout omitted (eval-mode identity)
        x = x + f

    # --- final LayerNorm + lm_head (lane-dense padded logits) ---
    hf = _layer_norm(x, lnfg_ref[...], lnfb_ref[...])
    o_ref[...] = jnp.dot(hf, wlm_ref[...], preferred_element_type=jnp.float32) + blm_ref[...]


def run_fused_forward(x_flat, p):
    # Single invocation, no grid: whole arrays live as single VMEM blocks.
    return pl.pallas_call(
        fused_forward_kernel,
        out_shape=jax.ShapeDtypeStruct((BT, VOCAB_PAD), jnp.float32),
    )(x_flat, p["bias"], p["ln1g"], p["ln1b"], p["wq"], p["wk"], p["wv"],
      p["wproj"], p["bproj"], p["ln2g"], p["ln2b"],
      p["w1"], p["b1"], p["w2"], p["b2"],
      p["lnfg"], p["lnfb"], p["wlm"], p["blm"])


# ----- deterministic parameter init (same layout as torch-equivalent weights) -
def init_params(key):
    def norm(k, shape, scale=0.02):
        return scale * jax.random.normal(k, shape, jnp.float32)

    keys = iter(jax.random.split(key, 64))
    params = {
        "tok_emb": norm(next(keys), (VOCAB, C), 1.0),
        "pos_emb": norm(next(keys), (BLOCK, C), 1.0),
        "layers": [],
        "lnf_g": jnp.ones((1, C), jnp.float32),
        "lnf_b": jnp.zeros((1, C), jnp.float32),
        "wlm": norm(next(keys), (C, VOCAB)),
        "blm": jnp.zeros((1, VOCAB), jnp.float32),
    }
    for _ in range(NUM_LAYERS):
        layer = (
            jnp.ones((1, C), jnp.float32), jnp.zeros((1, C), jnp.float32),   # ln1
            norm(next(keys), (C, C)),   # Wq (heads stacked column-wise)
            norm(next(keys), (C, C)),   # Wk
            norm(next(keys), (C, C)),   # Wv
            norm(next(keys), (C, C)), jnp.zeros((1, C), jnp.float32),        # proj
            jnp.ones((1, C), jnp.float32), jnp.zeros((1, C), jnp.float32),   # ln2
            norm(next(keys), (C, 4 * C)), jnp.zeros((1, 4 * C), jnp.float32),   # ffn1
            norm(next(keys), (4 * C, C)), jnp.zeros((1, C), jnp.float32),       # ffn2
        )
        params["layers"].append(layer)
    return params


# ----- wrapper-side weight packing (per-head slicing, padding, mask, scaling) -
def pack_params(params):
    scale = C ** (-0.5)   # NOTE: PyTorch Head scales by num_embeddings**-0.5

    def heads_from_cols(w):   # (C, C), head h in columns [h*hd:(h+1)*hd] -> (H, C, hd)
        return jnp.transpose(w.reshape(C, NUM_HEADS, HEAD_DIM), (1, 0, 2))

    def heads_from_rows(w):   # (C, C), head h in rows [h*hd:(h+1)*hd] -> (H, hd, C)
        return w.reshape(NUM_HEADS, HEAD_DIM, C)

    layers = params["layers"]
    packed = dict(
        ln1g=jnp.stack([l[0] for l in layers]),
        ln1b=jnp.stack([l[1] for l in layers]),
        wq=jnp.stack([heads_from_cols(l[2] * scale) for l in layers]),  # scale folded in
        wk=jnp.stack([heads_from_cols(l[3]) for l in layers]),
        wv=jnp.stack([heads_from_cols(l[4]) for l in layers]),
        wproj=jnp.stack([heads_from_rows(l[5]) for l in layers]),
        bproj=jnp.stack([l[6] for l in layers]),
        ln2g=jnp.stack([l[7] for l in layers]),
        ln2b=jnp.stack([l[8] for l in layers]),
        w1=jnp.stack([l[9] for l in layers]),
        b1=jnp.stack([l[10] for l in layers]),
        w2=jnp.stack([l[11] for l in layers]),
        b2=jnp.stack([l[12] for l in layers]),
        lnfg=params["lnf_g"],
        lnfb=params["lnf_b"],
        wlm=jnp.pad(params["wlm"], ((0, 0), (0, VOCAB_PAD - VOCAB))),
        blm=jnp.pad(params["blm"], ((0, 0), (0, VOCAB_PAD - VOCAB))),
    )
    # Additive mask over flattened (B*T) rows: causal within each batch block,
    # NEG_INF across batches / future positions.
    r = jnp.arange(BT)
    same_batch = (r[:, None] // T) == (r[None, :] // T)
    causal = (r[None, :] % T) <= (r[:, None] % T)
    packed["bias"] = jnp.where(same_batch & causal, 0.0, NEG_INF).astype(jnp.float32)
    return packed


# ----- full forward (embedding gather/add is glue in plain JAX) ---------------
@jax.jit
def forward(tokens, params, targets=None):
    p = pack_params(params)
    tok_emb = params["tok_emb"][tokens]                    # (B, T, C) gather
    pos_emb = params["pos_emb"][jnp.arange(T)]             # (T, C)
    x = (tok_emb + pos_emb[None, :, :]).reshape(BT, C)     # batch flattened
    logits_pad = run_fused_forward(x, p)                   # (BT, VOCAB_PAD)
    logits = logits_pad[:, :VOCAB].reshape(B, T, VOCAB)
    loss = None                                            # targets=None path
    return logits, loss


if __name__ == "__main__":
    key = jax.random.PRNGKey(0)
    pkey, tkey = jax.random.split(key)
    params = init_params(pkey)
    tokens = jax.random.randint(tkey, (B, T), 0, VOCAB, dtype=jnp.int32)
    logits, loss = forward(tokens, params)
    logits = jax.block_until_ready(logits)
    assert logits.shape == (B, T, VOCAB) and logits.dtype == jnp.float32
    assert bool(jnp.all(jnp.isfinite(logits)))
    assert loss is None
    print("KERNEL_OK")
</pallas_src>

<mosaic_0001>
module attributes {stable_mosaic.version = 11 : i64} {
  func.func @fused_forward_kernel(%arg0: memref<16x32xf32, #tpu.memory_space<vmem>>, %arg1: memref<16x16xf32, #tpu.memory_space<vmem>>, %arg2: memref<2x1x32xf32, #tpu.memory_space<vmem>>, %arg3: memref<2x1x32xf32, #tpu.memory_space<vmem>>, %arg4: memref<2x4x32x8xf32, #tpu.memory_space<vmem>>, %arg5: memref<2x4x32x8xf32, #tpu.memory_space<vmem>>, %arg6: memref<2x4x32x8xf32, #tpu.memory_space<vmem>>, %arg7: memref<2x4x8x32xf32, #tpu.memory_space<vmem>>, %arg8: memref<2x1x32xf32, #tpu.memory_space<vmem>>, %arg9: memref<2x1x32xf32, #tpu.memory_space<vmem>>, %arg10: memref<2x1x32xf32, #tpu.memory_space<vmem>>, %arg11: memref<2x32x128xf32, #tpu.memory_space<vmem>>, %arg12: memref<2x1x128xf32, #tpu.memory_space<vmem>>, %arg13: memref<2x128x32xf32, #tpu.memory_space<vmem>>, %arg14: memref<2x1x32xf32, #tpu.memory_space<vmem>>, %arg15: memref<1x32xf32, #tpu.memory_space<vmem>>, %arg16: memref<1x32xf32, #tpu.memory_space<vmem>>, %arg17: memref<32x128xf32, #tpu.memory_space<vmem>>, %arg18: memref<1x128xf32, #tpu.memory_space<vmem>>, %arg19: memref<16x128xf32, #tpu.memory_space<vmem>>) attributes {dimension_semantics = [], scalar_prefetch = 0 : i64, scratch_operands = 0 : i64, tpu.core_type = #tpu.core_type<tc>} {
    %c0 = arith.constant 0 : index
    %c0_0 = arith.constant 0 : index
    %0 = vector.load %arg0[%c0, %c0_0] : memref<16x32xf32, #tpu.memory_space<vmem>>, vector<16x32xf32>
    %c0_1 = arith.constant 0 : index
    %c0_2 = arith.constant 0 : index
    %1 = vector.load %arg1[%c0_1, %c0_2] : memref<16x16xf32, #tpu.memory_space<vmem>>, vector<16x16xf32>
    %c0_3 = arith.constant 0 : index
    %c0_4 = arith.constant 0 : index
    %c0_5 = arith.constant 0 : index
    %2 = vector.load %arg2[%c0_3, %c0_4, %c0_5] : memref<2x1x32xf32, #tpu.memory_space<vmem>>, vector<1x1x32xf32>
    %3 = vector.shape_cast %2 : vector<1x1x32xf32> to vector<1x32xf32>
    %c0_6 = arith.constant 0 : index
    %c0_7 = arith.constant 0 : index
    %c0_8 = arith.constant 0 : index
    %4 = vector.load %arg3[%c0_6, %c0_7, %c0_8] : memref<2x1x32xf32, #tpu.memory_space<vmem>>, vector<1x1x32xf32>
    %5 = vector.shape_cast %4 : vector<1x1x32xf32> to vector<1x32xf32>
    %cst = arith.constant dense<0.000000e+00> : vector<16xf32>
    %6 = vector.multi_reduction <add>, %0, %cst [1] : vector<16x32xf32> to vector<16xf32>
    %7 = vector.shape_cast %6 : vector<16xf32> to vector<16x1xf32>
    %cst_9 = arith.constant 3.200000e+01 : f32
    %8 = vector.broadcast %cst_9 : f32 to vector<16x1xf32>
    %9 = arith.divf %7, %8 : vector<16x1xf32>
    %10 = vector.broadcast %9 : vector<16x1xf32> to vector<16x32xf32>
    %11 = arith.subf %0, %10 : vector<16x32xf32>
    %12 = arith.mulf %11, %11 : vector<16x32xf32>
    %cst_10 = arith.constant dense<0.000000e+00> : vector<16xf32>
    %13 = vector.multi_reduction <add>, %12, %cst_10 [1] : vector<16x32xf32> to vector<16xf32>
    %14 = vector.shape_cast %13 : vector<16xf32> to vector<16x1xf32>
    %cst_11 = arith.constant 3.200000e+01 : f32
    %15 = vector.broadcast %cst_11 : f32 to vector<16x1xf32>
    %16 = arith.divf %14, %15 : vector<16x1xf32>
    %17 = vector.broadcast %9 : vector<16x1xf32> to vector<16x32xf32>
    %18 = arith.subf %0, %17 : vector<16x32xf32>
    %cst_12 = arith.constant 9.99999974E-6 : f32
    %19 = vector.broadcast %cst_12 : f32 to vector<16x1xf32>
    %20 = arith.addf %16, %19 : vector<16x1xf32>
    %21 = math.rsqrt %20 : vector<16x1xf32>
    %22 = vector.broadcast %21 : vector<16x1xf32> to vector<16x32xf32>
    %23 = arith.mulf %18, %22 : vector<16x32xf32>
    %24 = vector.broadcast %3 : vector<1x32xf32> to vector<16x32xf32>
    %25 = arith.mulf %23, %24 : vector<16x32xf32>
    %26 = vector.broadcast %5 : vector<1x32xf32> to vector<16x32xf32>
    %27 = arith.addf %25, %26 : vector<16x32xf32>
    %c0_13 = arith.constant 0 : index
    %c0_14 = arith.constant 0 : index
    %c0_15 = arith.constant 0 : index
    %28 = vector.load %arg8[%c0_13, %c0_14, %c0_15] : memref<2x1x32xf32, #tpu.memory_space<vmem>>, vector<1x1x32xf32>
    %29 = vector.shape_cast %28 : vector<1x1x32xf32> to vector<1x32xf32>
    %c0_16 = arith.constant 0 : index
    %c0_17 = arith.constant 0 : index
    %c0_18 = arith.constant 0 : index
    %c0_19 = arith.constant 0 : index
    %30 = vector.load %arg4[%c0_16, %c0_17, %c0_18, %c0_19] : memref<2x4x32x8xf32, #tpu.memory_space<vmem>>, vector<1x1x32x8xf32>
    %31 = vector.shape_cast %30 : vector<1x1x32x8xf32> to vector<32x8xf32>
    %cst_20 = arith.constant dense<0.000000e+00> : vector<16x8xf32>
    %32 = tpu.matmul %27, %31, %cst_20 {dimension_numbers = #tpu.dot_dimension_numbers<[1], [0], [0], [1], [0, 0, 1, 1], [], []>} : vector<16x32xf32>, vector<32x8xf32>, vector<16x8xf32> -> vector<16x8xf32>
    %c0_21 = arith.constant 0 : index
    %c0_22 = arith.constant 0 : index
    %c0_23 = arith.constant 0 : index
    %c0_24 = arith.constant 0 : index
    %33 = vector.load %arg5[%c0_21, %c0_22, %c0_23, %c0_24] : memref<2x4x32x8xf32, #tpu.memory_space<vmem>>, vector<1x1x32x8xf32>
    %34 = vector.shape_cast %33 : vector<1x1x32x8xf32> to vector<32x8xf32>
    %cst_25 = arith.constant dense<0.000000e+00> : vector<16x8xf32>
    %35 = tpu.matmul %27, %34, %cst_25 {dimension_numbers = #tpu.dot_dimension_numbers<[1], [0], [0], [1], [0, 0, 1, 1], [], []>} : vector<16x32xf32>, vector<32x8xf32>, vector<16x8xf32> -> vector<16x8xf32>
    %c0_26 = arith.constant 0 : index
    %c0_27 = arith.constant 0 : index
    %c0_28 = arith.constant 0 : index
    %c0_29 = arith.constant 0 : index
    %36 = vector.load %arg6[%c0_26, %c0_27, %c0_28, %c0_29] : memref<2x4x32x8xf32, #tpu.memory_space<vmem>>, vector<1x1x32x8xf32>
    %37 = vector.shape_cast %36 : vector<1x1x32x8xf32> to vector<32x8xf32>
    %cst_30 = arith.constant dense<0.000000e+00> : vector<16x8xf32>
    %38 = tpu.matmul %27, %37, %cst_30 {dimension_numbers = #tpu.dot_dimension_numbers<[1], [0], [0], [1], [0, 0, 1, 1], [], []>} : vector<16x32xf32>, vector<32x8xf32>, vector<16x8xf32> -> vector<16x8xf32>
    %39 = tpu.transpose %35, [1, 0] : vector<16x8xf32> -> vector<8x16xf32>
    %cst_31 = arith.constant dense<0.000000e+00> : vector<16x16xf32>
    %40 = tpu.matmul %32, %39, %cst_31 {dimension_numbers = #tpu.dot_dimension_numbers<[1], [0], [0], [1], [0, 0, 1, 1], [], []>} : vector<16x8xf32>, vector<8x16xf32>, vector<16x16xf32> -> vector<16x16xf32>
    %41 = arith.addf %40, %1 : vector<16x16xf32>
    %cst_32 = arith.constant dense<0xFF800000> : vector<16xf32>
    %42 = vector.multi_reduction <maximumf>, %41, %cst_32 [1] : vector<16x16xf32> to vector<16xf32>
    %43 = vector.shape_cast %42 : vector<16xf32> to vector<16x1xf32>
    %44 = vector.broadcast %43 : vector<16x1xf32> to vector<16x16xf32>
    %45 = arith.subf %41, %44 : vector<16x16xf32>
    %46 = math.exp %45 : vector<16x16xf32>
    %cst_33 = arith.constant dense<0.000000e+00> : vector<16xf32>
    %47 = vector.multi_reduction <add>, %46, %cst_33 [1] : vector<16x16xf32> to vector<16xf32>
    %48 = vector.shape_cast %47 : vector<16xf32> to vector<16x1xf32>
    %49 = tpu.reciprocal %48 {approx = true} : vector<16x1xf32> -> vector<16x1xf32>
    %50 = vector.broadcast %49 : vector<16x1xf32> to vector<16x16xf32>
    %51 = arith.mulf %46, %50 : vector<16x16xf32>
    %cst_34 = arith.constant dense<0.000000e+00> : vector<16x8xf32>
    %52 = tpu.matmul %51, %38, %cst_34 {dimension_numbers = #tpu.dot_dimension_numbers<[1], [0], [0], [1], [0, 0, 1, 1], [], []>} : vector<16x16xf32>, vector<16x8xf32>, vector<16x8xf32> -> vector<16x8xf32>
    %c0_35 = arith.constant 0 : index
    %c0_36 = arith.constant 0 : index
    %c0_37 = arith.constant 0 : index
    %c0_38 = arith.constant 0 : index
    %53 = vector.load %arg7[%c0_35, %c0_36, %c0_37, %c0_38] : memref<2x4x8x32xf32, #tpu.memory_space<vmem>>, vector<1x1x8x32xf32>
    %54 = vector.shape_cast %53 : vector<1x1x8x32xf32> to vector<8x32xf32>
    %cst_39 = arith.constant dense<0.000000e+00> : vector<16x32xf32>
    %55 = tpu.matmul %52, %54, %cst_39 {dimension_numbers = #tpu.dot_dimension_numbers<[1], [0], [0], [1], [0, 0, 1, 1], [], []>} : vector<16x8xf32>, vector<8x32xf32>, vector<16x32xf32> -> vector<16x32xf32>
    %56 = vector.broadcast %29 : vector<1x32xf32> to vector<16x32xf32>
    %57 = arith.addf %56, %55 : vector<16x32xf32>
    %c0_40 = arith.constant 0 : index
    %c1 = arith.constant 1 : index
    %c0_41 = arith.constant 0 : index
    %c0_42 = arith.constant 0 : index
    %58 = vector.load %arg4[%c0_40, %c1, %c0_41, %c0_42] : memref<2x4x32x8xf32, #tpu.memory_space<vmem>>, vector<1x1x32x8xf32>
    %59 = vector.shape_cast %58 : vector<1x1x32x8xf32> to vector<32x8xf32>
    %cst_43 = arith.constant dense<0.000000e+00> : vector<16x8xf32>
    %60 = tpu.matmul %27, %59, %cst_43 {dimension_numbers = #tpu.dot_dimension_numbers<[1], [0], [0], [1], [0, 0, 1, 1], [], []>} : vector<16x32xf32>, vector<32x8xf32>, vector<16x8xf32> -> vector<16x8xf32>
    %c0_44 = arith.constant 0 : index
    %c1_45 = arith.constant 1 : index
    %c0_46 = arith.constant 0 : index
    %c0_47 = arith.constant 0 : index
    %61 = vector.load %arg5[%c0_44, %c1_45, %c0_46, %c0_47] : memref<2x4x32x8xf32, #tpu.memory_space<vmem>>, vector<1x1x32x8xf32>
    %62 = vector.shape_cast %61 : vector<1x1x32x8xf32> to vector<32x8xf32>
    %cst_48 = arith.constant dense<0.000000e+00> : vector<16x8xf32>
    %63 = tpu.matmul %27, %62, %cst_48 {dimension_numbers = #tpu.dot_dimension_numbers<[1], [0], [0], [1], [0, 0, 1, 1], [], []>} : vector<16x32xf32>, vector<32x8xf32>, vector<16x8xf32> -> vector<16x8xf32>
    %c0_49 = arith.constant 0 : index
    %c1_50 = arith.constant 1 : index
    %c0_51 = arith.constant 0 : index
    %c0_52 = arith.constant 0 : index
    %64 = vector.load %arg6[%c0_49, %c1_50, %c0_51, %c0_52] : memref<2x4x32x8xf32, #tpu.memory_space<vmem>>, vector<1x1x32x8xf32>
    %65 = vector.shape_cast %64 : vector<1x1x32x8xf32> to vector<32x8xf32>
    %cst_53 = arith.constant dense<0.000000e+00> : vector<16x8xf32>
    %66 = tpu.matmul %27, %65, %cst_53 {dimension_numbers = #tpu.dot_dimension_numbers<[1], [0], [0], [1], [0, 0, 1, 1], [], []>} : vector<16x32xf32>, vector<32x8xf32>, vector<16x8xf32> -> vector<16x8xf32>
    %67 = tpu.transpose %63, [1, 0] : vector<16x8xf32> -> vector<8x16xf32>
    %cst_54 = arith.constant dense<0.000000e+00> : vector<16x16xf32>
    %68 = tpu.matmul %60, %67, %cst_54 {dimension_numbers = #tpu.dot_dimension_numbers<[1], [0], [0], [1], [0, 0, 1, 1], [], []>} : vector<16x8xf32>, vector<8x16xf32>, vector<16x16xf32> -> vector<16x16xf32>
    %69 = arith.addf %68, %1 : vector<16x16xf32>
    %cst_55 = arith.constant dense<0xFF800000> : vector<16xf32>
    %70 = vector.multi_reduction <maximumf>, %69, %cst_55 [1] : vector<16x16xf32> to vector<16xf32>
    %71 = vector.shape_cast %70 : vector<16xf32> to vector<16x1xf32>
    %72 = vector.broadcast %71 : vector<16x1xf32> to vector<16x16xf32>
    %73 = arith.subf %69, %72 : vector<16x16xf32>
    %74 = math.exp %73 : vector<16x16xf32>
    %cst_56 = arith.constant dense<0.000000e+00> : vector<16xf32>
    %75 = vector.multi_reduction <add>, %74, %cst_56 [1] : vector<16x16xf32> to vector<16xf32>
    %76 = vector.shape_cast %75 : vector<16xf32> to vector<16x1xf32>
    %77 = tpu.reciprocal %76 {approx = true} : vector<16x1xf32> -> vector<16x1xf32>
    %78 = vector.broadcast %77 : vector<16x1xf32> to vector<16x16xf32>
    %79 = arith.mulf %74, %78 : vector<16x16xf32>
    %cst_57 = arith.constant dense<0.000000e+00> : vector<16x8xf32>
    %80 = tpu.matmul %79, %66, %cst_57 {dimension_numbers = #tpu.dot_dimension_numbers<[1], [0], [0], [1], [0, 0, 1, 1], [], []>} : vector<16x16xf32>, vector<16x8xf32>, vector<16x8xf32> -> vector<16x8xf32>
    %c0_58 = arith.constant 0 : index
    %c1_59 = arith.constant 1 : index
    %c0_60 = arith.constant 0 : index
    %c0_61 = arith.constant 0 : index
    %81 = vector.load %arg7[%c0_58, %c1_59, %c0_60, %c0_61] : memref<2x4x8x32xf32, #tpu.memory_space<vmem>>, vector<1x1x8x32xf32>
    %82 = vector.shape_cast %81 : vector<1x1x8x32xf32> to vector<8x32xf32>
    %cst_62 = arith.constant dense<0.000000e+00> : vector<16x32xf32>
    %83 = tpu.matmul %80, %82, %cst_62 {dimension_numbers = #tpu.dot_dimension_numbers<[1], [0], [0], [1], [0, 0, 1, 1], [], []>} : vector<16x8xf32>, vector<8x32xf32>, vector<16x32xf32> -> vector<16x32xf32>
    %84 = arith.addf %57, %83 : vector<16x32xf32>
    %c0_63 = arith.constant 0 : index
    %c2 = arith.constant 2 : index
    %c0_64 = arith.constant 0 : index
    %c0_65 = arith.constant 0 : index
    %85 = vector.load %arg4[%c0_63, %c2, %c0_64, %c0_65] : memref<2x4x32x8xf32, #tpu.memory_space<vmem>>, vector<1x1x32x8xf32>
    %86 = vector.shape_cast %85 : vector<1x1x32x8xf32> to vector<32x8xf32>
    %cst_66 = arith.constant dense<0.000000e+00> : vector<16x8xf32>
    %87 = tpu.matmul %27, %86, %cst_66 {dimension_numbers = #tpu.dot_dimension_numbers<[1], [0], [0], [1], [0, 0, 1, 1], [], []>} : vector<16x32xf32>, vector<32x8xf32>, vector<16x8xf32> -> vector<16x8xf32>
    %c0_67 = arith.constant 0 : index
    %c2_68 = arith.constant 2 : index
    %c0_69 = arith.constant 0 : index
    %c0_70 = arith.constant 0 : index
    %88 = vector.load %arg5[%c0_67, %c2_68, %c0_69, %c0_70] : memref<2x4x32x8xf32, #tpu.memory_space<vmem>>, vector<1x1x32x8xf32>
    %89 = vector.shape_cast %88 : vector<1x1x32x8xf32> to vector<32x8xf32>
    %cst_71 = arith.constant dense<0.000000e+00> : vector<16x8xf32>
    %90 = tpu.matmul %27, %89, %cst_71 {dimension_numbers = #tpu.dot_dimension_numbers<[1], [0], [0], [1], [0, 0, 1, 1], [], []>} : vector<16x32xf32>, vector<32x8xf32>, vector<16x8xf32> -> vector<16x8xf32>
    %c0_72 = arith.constant 0 : index
    %c2_73 = arith.constant 2 : index
    %c0_74 = arith.constant 0 : index
    %c0_75 = arith.constant 0 : index
    %91 = vector.load %arg6[%c0_72, %c2_73, %c0_74, %c0_75] : memref<2x4x32x8xf32, #tpu.memory_space<vmem>>, vector<1x1x32x8xf32>
    %92 = vector.shape_cast %91 : vector<1x1x32x8xf32> to vector<32x8xf32>
    %cst_76 = arith.constant dense<0.000000e+00> : vector<16x8xf32>
    %93 = tpu.matmul %27, %92, %cst_76 {dimension_numbers = #tpu.dot_dimension_numbers<[1], [0], [0], [1], [0, 0, 1, 1], [], []>} : vector<16x32xf32>, vector<32x8xf32>, vector<16x8xf32> -> vector<16x8xf32>
    %94 = tpu.transpose %90, [1, 0] : vector<16x8xf32> -> vector<8x16xf32>
    %cst_77 = arith.constant dense<0.000000e+00> : vector<16x16xf32>
    %95 = tpu.matmul %87, %94, %cst_77 {dimension_numbers = #tpu.dot_dimension_numbers<[1], [0], [0], [1], [0, 0, 1, 1], [], []>} : vector<16x8xf32>, vector<8x16xf32>, vector<16x16xf32> -> vector<16x16xf32>
    %96 = arith.addf %95, %1 : vector<16x16xf32>
    %cst_78 = arith.constant dense<0xFF800000> : vector<16xf32>
    %97 = vector.multi_reduction <maximumf>, %96, %cst_78 [1] : vector<16x16xf32> to vector<16xf32>
    %98 = vector.shape_cast %97 : vector<16xf32> to vector<16x1xf32>
    %99 = vector.broadcast %98 : vector<16x1xf32> to vector<16x16xf32>
    %100 = arith.subf %96, %99 : vector<16x16xf32>
    %101 = math.exp %100 : vector<16x16xf32>
    %cst_79 = arith.constant dense<0.000000e+00> : vector<16xf32>
    %102 = vector.multi_reduction <add>, %101, %cst_79 [1] : vector<16x16xf32> to vector<16xf32>
    %103 = vector.shape_cast %102 : vector<16xf32> to vector<16x1xf32>
    %104 = tpu.reciprocal %103 {approx = true} : vector<16x1xf32> -> vector<16x1xf32>
    %105 = vector.broadcast %104 : vector<16x1xf32> to vector<16x16xf32>
    %106 = arith.mulf %101, %105 : vector<16x16xf32>
    %cst_80 = arith.constant dense<0.000000e+00> : vector<16x8xf32>
    %107 = tpu.matmul %106, %93, %cst_80 {dimension_numbers = #tpu.dot_dimension_numbers<[1], [0], [0], [1], [0, 0, 1, 1], [], []>} : vector<16x16xf32>, vector<16x8xf32>, vector<16x8xf32> -> vector<16x8xf32>
    %c0_81 = arith.constant 0 : index
    %c2_82 = arith.constant 2 : index
    %c0_83 = arith.constant 0 : index
    %c0_84 = arith.constant 0 : index
    %108 = vector.load %arg7[%c0_81, %c2_82, %c0_83, %c0_84] : memref<2x4x8x32xf32, #tpu.memory_space<vmem>>, vector<1x1x8x32xf32>
    %109 = vector.shape_cast %108 : vector<1x1x8x32xf32> to vector<8x32xf32>
    %cst_85 = arith.constant dense<0.000000e+00> : vector<16x32xf32>
    %110 = tpu.matmul %107, %109, %cst_85 {dimension_numbers = #tpu.dot_dimension_numbers<[1], [0], [0], [1], [0, 0, 1, 1], [], []>} : vector<16x8xf32>, vector<8x32xf32>, vector<16x32xf32> -> vector<16x32xf32>
    %111 = arith.addf %84, %110 : vector<16x32xf32>
    %c0_86 = arith.constant 0 : index
    %c3 = arith.constant 3 : index
    %c0_87 = arith.constant 0 : index
    %c0_88 = arith.constant 0 : index
    %112 = vector.load %arg4[%c0_86, %c3, %c0_87, %c0_88] : memref<2x4x32x8xf32, #tpu.memory_space<vmem>>, vector<1x1x32x8xf32>
    %113 = vector.shape_cast %112 : vector<1x1x32x8xf32> to vector<32x8xf32>
    %cst_89 = arith.constant dense<0.000000e+00> : vector<16x8xf32>
    %114 = tpu.matmul %27, %113, %cst_89 {dimension_numbers = #tpu.dot_dimension_numbers<[1], [0], [0], [1], [0, 0, 1, 1], [], []>} : vector<16x32xf32>, vector<32x8xf32>, vector<16x8xf32> -> vector<16x8xf32>
    %c0_90 = arith.constant 0 : index
    %c3_91 = arith.constant 3 : index
    %c0_92 = arith.constant 0 : index
    %c0_93 = arith.constant 0 : index
    %115 = vector.load %arg5[%c0_90, %c3_91, %c0_92, %c0_93] : memref<2x4x32x8xf32, #tpu.memory_space<vmem>>, vector<1x1x32x8xf32>
    %116 = vector.shape_cast %115 : vector<1x1x32x8xf32> to vector<32x8xf32>
    %cst_94 = arith.constant dense<0.000000e+00> : vector<16x8xf32>
    %117 = tpu.matmul %27, %116, %cst_94 {dimension_numbers = #tpu.dot_dimension_numbers<[1], [0], [0], [1], [0, 0, 1, 1], [], []>} : vector<16x32xf32>, vector<32x8xf32>, vector<16x8xf32> -> vector<16x8xf32>
    %c0_95 = arith.constant 0 : index
    %c3_96 = arith.constant 3 : index
    %c0_97 = arith.constant 0 : index
    %c0_98 = arith.constant 0 : index
    %118 = vector.load %arg6[%c0_95, %c3_96, %c0_97, %c0_98] : memref<2x4x32x8xf32, #tpu.memory_space<vmem>>, vector<1x1x32x8xf32>
    %119 = vector.shape_cast %118 : vector<1x1x32x8xf32> to vector<32x8xf32>
    %cst_99 = arith.constant dense<0.000000e+00> : vector<16x8xf32>
    %120 = tpu.matmul %27, %119, %cst_99 {dimension_numbers = #tpu.dot_dimension_numbers<[1], [0], [0], [1], [0, 0, 1, 1], [], []>} : vector<16x32xf32>, vector<32x8xf32>, vector<16x8xf32> -> vector<16x8xf32>
    %121 = tpu.transpose %117, [1, 0] : vector<16x8xf32> -> vector<8x16xf32>
    %cst_100 = arith.constant dense<0.000000e+00> : vector<16x16xf32>
    %122 = tpu.matmul %114, %121, %cst_100 {dimension_numbers = #tpu.dot_dimension_numbers<[1], [0], [0], [1], [0, 0, 1, 1], [], []>} : vector<16x8xf32>, vector<8x16xf32>, vector<16x16xf32> -> vector<16x16xf32>
    %123 = arith.addf %122, %1 : vector<16x16xf32>
    %cst_101 = arith.constant dense<0xFF800000> : vector<16xf32>
    %124 = vector.multi_reduction <maximumf>, %123, %cst_101 [1] : vector<16x16xf32> to vector<16xf32>
    %125 = vector.shape_cast %124 : vector<16xf32> to vector<16x1xf32>
    %126 = vector.broadcast %125 : vector<16x1xf32> to vector<16x16xf32>
    %127 = arith.subf %123, %126 : vector<16x16xf32>
    %128 = math.exp %127 : vector<16x16xf32>
    %cst_102 = arith.constant dense<0.000000e+00> : vector<16xf32>
    %129 = vector.multi_reduction <add>, %128, %cst_102 [1] : vector<16x16xf32> to vector<16xf32>
    %130 = vector.shape_cast %129 : vector<16xf32> to vector<16x1xf32>
    %131 = tpu.reciprocal %130 {approx = true} : vector<16x1xf32> -> vector<16x1xf32>
    %132 = vector.broadcast %131 : vector<16x1xf32> to vector<16x16xf32>
    %133 = arith.mulf %128, %132 : vector<16x16xf32>
    %cst_103 = arith.constant dense<0.000000e+00> : vector<16x8xf32>
    %134 = tpu.matmul %133, %120, %cst_103 {dimension_numbers = #tpu.dot_dimension_numbers<[1], [0], [0], [1], [0, 0, 1, 1], [], []>} : vector<16x16xf32>, vector<16x8xf32>, vector<16x8xf32> -> vector<16x8xf32>
    %c0_104 = arith.constant 0 : index
    %c3_105 = arith.constant 3 : index
    %c0_106 = arith.constant 0 : index
    %c0_107 = arith.constant 0 : index
    %135 = vector.load %arg7[%c0_104, %c3_105, %c0_106, %c0_107] : memref<2x4x8x32xf32, #tpu.memory_space<vmem>>, vector<1x1x8x32xf32>
    %136 = vector.shape_cast %135 : vector<1x1x8x32xf32> to vector<8x32xf32>
    %cst_108 = arith.constant dense<0.000000e+00> : vector<16x32xf32>
    %137 = tpu.matmul %134, %136, %cst_108 {dimension_numbers = #tpu.dot_dimension_numbers<[1], [0], [0], [1], [0, 0, 1, 1], [], []>} : vector<16x8xf32>, vector<8x32xf32>, vector<16x32xf32> -> vector<16x32xf32>
    %138 = arith.addf %111, %137 : vector<16x32xf32>
    %139 = arith.addf %0, %138 : vector<16x32xf32>
    %c0_109 = arith.constant 0 : index
    %c0_110 = arith.constant 0 : index
    %c0_111 = arith.constant 0 : index
    %140 = vector.load %arg9[%c0_109, %c0_110, %c0_111] : memref<2x1x32xf32, #tpu.memory_space<vmem>>, vector<1x1x32xf32>
    %141 = vector.shape_cast %140 : vector<1x1x32xf32> to vector<1x32xf32>
    %c0_112 = arith.constant 0 : index
    %c0_113 = arith.constant 0 : index
    %c0_114 = arith.constant 0 : index
    %142 = vector.load %arg10[%c0_112, %c0_113, %c0_114] : memref<2x1x32xf32, #tpu.memory_space<vmem>>, vector<1x1x32xf32>
    %143 = vector.shape_cast %142 : vector<1x1x32xf32> to vector<1x32xf32>
    %cst_115 = arith.constant dense<0.000000e+00> : vector<16xf32>
    %144 = vector.multi_reduction <add>, %139, %cst_115 [1] : vector<16x32xf32> to vector<16xf32>
    %145 = vector.shape_cast %144 : vector<16xf32> to vector<16x1xf32>
    %cst_116 = arith.constant 3.200000e+01 : f32
    %146 = vector.broadcast %cst_116 : f32 to vector<16x1xf32>
    %147 = arith.divf %145, %146 : vector<16x1xf32>
    %148 = vector.broadcast %147 : vector<16x1xf32> to vector<16x32xf32>
    %149 = arith.subf %139, %148 : vector<16x32xf32>
    %150 = arith.mulf %149, %149 : vector<16x32xf32>
    %cst_117 = arith.constant dense<0.000000e+00> : vector<16xf32>
    %151 = vector.multi_reduction <add>, %150, %cst_117 [1] : vector<16x32xf32> to vector<16xf32>
    %152 = vector.shape_cast %151 : vector<16xf32> to vector<16x1xf32>
    %cst_118 = arith.constant 3.200000e+01 : f32
    %153 = vector.broadcast %cst_118 : f32 to vector<16x1xf32>
    %154 = arith.divf %152, %153 : vector<16x1xf32>
    %155 = vector.broadcast %147 : vector<16x1xf32> to vector<16x32xf32>
    %156 = arith.subf %139, %155 : vector<16x32xf32>
    %cst_119 = arith.constant 9.99999974E-6 : f32
    %157 = vector.broadcast %cst_119 : f32 to vector<16x1xf32>
    %158 = arith.addf %154, %157 : vector<16x1xf32>
    %159 = math.rsqrt %158 : vector<16x1xf32>
    %160 = vector.broadcast %159 : vector<16x1xf32> to vector<16x32xf32>
    %161 = arith.mulf %156, %160 : vector<16x32xf32>
    %162 = vector.broadcast %141 : vector<1x32xf32> to vector<16x32xf32>
    %163 = arith.mulf %161, %162 : vector<16x32xf32>
    %164 = vector.broadcast %143 : vector<1x32xf32> to vector<16x32xf32>
    %165 = arith.addf %163, %164 : vector<16x32xf32>
    %c0_120 = arith.constant 0 : index
    %c0_121 = arith.constant 0 : index
    %c0_122 = arith.constant 0 : index
    %166 = vector.load %arg11[%c0_120, %c0_121, %c0_122] : memref<2x32x128xf32, #tpu.memory_space<vmem>>, vector<1x32x128xf32>
    %167 = vector.shape_cast %166 : vector<1x32x128xf32> to vector<32x128xf32>
    %cst_123 = arith.constant dense<0.000000e+00> : vector<16x128xf32>
    %168 = tpu.matmul %165, %167, %cst_123 {dimension_numbers = #tpu.dot_dimension_numbers<[1], [0], [0], [1], [0, 0, 1, 1], [], []>} : vector<16x32xf32>, vector<32x128xf32>, vector<16x128xf32> -> vector<16x128xf32>
    %c0_124 = arith.constant 0 : index
    %c0_125 = arith.constant 0 : index
    %c0_126 = arith.constant 0 : index
    %169 = vector.load %arg12[%c0_124, %c0_125, %c0_126] : memref<2x1x128xf32, #tpu.memory_space<vmem>>, vector<1x1x128xf32>
    %170 = vector.shape_cast %169 : vector<1x1x128xf32> to vector<1x128xf32>
    %171 = vector.broadcast %170 : vector<1x128xf32> to vector<16x128xf32>
    %172 = arith.addf %168, %171 : vector<16x128xf32>
    %cst_127 = arith.constant 0.000000e+00 : f32
    %173 = vector.broadcast %cst_127 : f32 to vector<16x128xf32>
    %174 = arith.maximumf %172, %173 : vector<16x128xf32>
    %c0_128 = arith.constant 0 : index
    %c0_129 = arith.constant 0 : index
    %c0_130 = arith.constant 0 : index
    %175 = vector.load %arg13[%c0_128, %c0_129, %c0_130] : memref<2x128x32xf32, #tpu.memory_space<vmem>>, vector<1x128x32xf32>
    %176 = vector.shape_cast %175 : vector<1x128x32xf32> to vector<128x32xf32>
    %cst_131 = arith.constant dense<0.000000e+00> : vector<16x32xf32>
    %177 = tpu.matmul %174, %176, %cst_131 {dimension_numbers = #tpu.dot_dimension_numbers<[1], [0], [0], [1], [0, 0, 1, 1], [], []>} : vector<16x128xf32>, vector<128x32xf32>, vector<16x32xf32> -> vector<16x32xf32>
    %c0_132 = arith.constant 0 : index
    %c0_133 = arith.constant 0 : index
    %c0_134 = arith.constant 0 : index
    %178 = vector.load %arg14[%c0_132, %c0_133, %c0_134] : memref<2x1x32xf32, #tpu.memory_space<vmem>>, vector<1x1x32xf32>
    %179 = vector.shape_cast %178 : vector<1x1x32xf32> to vector<1x32xf32>
    %180 = vector.broadcast %179 : vector<1x32xf32> to vector<16x32xf32>
    %181 = arith.addf %177, %180 : vector<16x32xf32>
    %182 = arith.addf %139, %181 : vector<16x32xf32>
    %c1_135 = arith.constant 1 : index
    %c0_136 = arith.constant 0 : index
    %c0_137 = arith.constant 0 : index
    %183 = vector.load %arg2[%c1_135, %c0_136, %c0_137] : memref<2x1x32xf32, #tpu.memory_space<vmem>>, vector<1x1x32xf32>
    %184 = vector.shape_cast %183 : vector<1x1x32xf32> to vector<1x32xf32>
    %c1_138 = arith.constant 1 : index
    %c0_139 = arith.constant 0 : index
    %c0_140 = arith.constant 0 : index
    %185 = vector.load %arg3[%c1_138, %c0_139, %c0_140] : memref<2x1x32xf32, #tpu.memory_space<vmem>>, vector<1x1x32xf32>
    %186 = vector.shape_cast %185 : vector<1x1x32xf32> to vector<1x32xf32>
    %cst_141 = arith.constant dense<0.000000e+00> : vector<16xf32>
    %187 = vector.multi_reduction <add>, %182, %cst_141 [1] : vector<16x32xf32> to vector<16xf32>
    %188 = vector.shape_cast %187 : vector<16xf32> to vector<16x1xf32>
    %cst_142 = arith.constant 3.200000e+01 : f32
    %189 = vector.broadcast %cst_142 : f32 to vector<16x1xf32>
    %190 = arith.divf %188, %189 : vector<16x1xf32>
    %191 = vector.broadcast %190 : vector<16x1xf32> to vector<16x32xf32>
    %192 = arith.subf %182, %191 : vector<16x32xf32>
    %193 = arith.mulf %192, %192 : vector<16x32xf32>
    %cst_143 = arith.constant dense<0.000000e+00> : vector<16xf32>
    %194 = vector.multi_reduction <add>, %193, %cst_143 [1] : vector<16x32xf32> to vector<16xf32>
    %195 = vector.shape_cast %194 : vector<16xf32> to vector<16x1xf32>
    %cst_144 = arith.constant 3.200000e+01 : f32
    %196 = vector.broadcast %cst_144 : f32 to vector<16x1xf32>
    %197 = arith.divf %195, %196 : vector<16x1xf32>
    %198 = vector.broadcast %190 : vector<16x1xf32> to vector<16x32xf32>
    %199 = arith.subf %182, %198 : vector<16x32xf32>
    %cst_145 = arith.constant 9.99999974E-6 : f32
    %200 = vector.broadcast %cst_145 : f32 to vector<16x1xf32>
    %201 = arith.addf %197, %200 : vector<16x1xf32>
    %202 = math.rsqrt %201 : vector<16x1xf32>
    %203 = vector.broadcast %202 : vector<16x1xf32> to vector<16x32xf32>
    %204 = arith.mulf %199, %203 : vector<16x32xf32>
    %205 = vector.broadcast %184 : vector<1x32xf32> to vector<16x32xf32>
    %206 = arith.mulf %204, %205 : vector<16x32xf32>
    %207 = vector.broadcast %186 : vector<1x32xf32> to vector<16x32xf32>
    %208 = arith.addf %206, %207 : vector<16x32xf32>
    %c1_146 = arith.constant 1 : index
    %c0_147 = arith.constant 0 : index
    %c0_148 = arith.constant 0 : index
    %209 = vector.load %arg8[%c1_146, %c0_147, %c0_148] : memref<2x1x32xf32, #tpu.memory_space<vmem>>, vector<1x1x32xf32>
    %210 = vector.shape_cast %209 : vector<1x1x32xf32> to vector<1x32xf32>
    %c1_149 = arith.constant 1 : index
    %c0_150 = arith.constant 0 : index
    %c0_151 = arith.constant 0 : index
    %c0_152 = arith.constant 0 : index
    %211 = vector.load %arg4[%c1_149, %c0_150, %c0_151, %c0_152] : memref<2x4x32x8xf32, #tpu.memory_space<vmem>>, vector<1x1x32x8xf32>
    %212 = vector.shape_cast %211 : vector<1x1x32x8xf32> to vector<32x8xf32>
    %cst_153 = arith.constant dense<0.000000e+00> : vector<16x8xf32>
    %213 = tpu.matmul %208, %212, %cst_153 {dimension_numbers = #tpu.dot_dimension_numbers<[1], [0], [0], [1], [0, 0, 1, 1], [], []>} : vector<16x32xf32>, vector<32x8xf32>, vector<16x8xf32> -> vector<16x8xf32>
    %c1_154 = arith.constant 1 : index
    %c0_155 = arith.constant 0 : index
    %c0_156 = arith.constant 0 : index
    %c0_157 = arith.constant 0 : index
    %214 = vector.load %arg5[%c1_154, %c0_155, %c0_156, %c0_157] : memref<2x4x32x8xf32, #tpu.memory_space<vmem>>, vector<1x1x32x8xf32>
    %215 = vector.shape_cast %214 : vector<1x1x32x8xf32> to vector<32x8xf32>
    %cst_158 = arith.constant dense<0.000000e+00> : vector<16x8xf32>
    %216 = tpu.matmul %208, %215, %cst_158 {dimension_numbers = #tpu.dot_dimension_numbers<[1], [0], [0], [1], [0, 0, 1, 1], [], []>} : vector<16x32xf32>, vector<32x8xf32>, vector<16x8xf32> -> vector<16x8xf32>
    %c1_159 = arith.constant 1 : index
    %c0_160 = arith.constant 0 : index
    %c0_161 = arith.constant 0 : index
    %c0_162 = arith.constant 0 : index
    %217 = vector.load %arg6[%c1_159, %c0_160, %c0_161, %c0_162] : memref<2x4x32x8xf32, #tpu.memory_space<vmem>>, vector<1x1x32x8xf32>
    %218 = vector.shape_cast %217 : vector<1x1x32x8xf32> to vector<32x8xf32>
    %cst_163 = arith.constant dense<0.000000e+00> : vector<16x8xf32>
    %219 = tpu.matmul %208, %218, %cst_163 {dimension_numbers = #tpu.dot_dimension_numbers<[1], [0], [0], [1], [0, 0, 1, 1], [], []>} : vector<16x32xf32>, vector<32x8xf32>, vector<16x8xf32> -> vector<16x8xf32>
    %220 = tpu.transpose %216, [1, 0] : vector<16x8xf32> -> vector<8x16xf32>
    %cst_164 = arith.constant dense<0.000000e+00> : vector<16x16xf32>
    %221 = tpu.matmul %213, %220, %cst_164 {dimension_numbers = #tpu.dot_dimension_numbers<[1], [0], [0], [1], [0, 0, 1, 1], [], []>} : vector<16x8xf32>, vector<8x16xf32>, vector<16x16xf32> -> vector<16x16xf32>
    %222 = arith.addf %221, %1 : vector<16x16xf32>
    %cst_165 = arith.constant dense<0xFF800000> : vector<16xf32>
    %223 = vector.multi_reduction <maximumf>, %222, %cst_165 [1] : vector<16x16xf32> to vector<16xf32>
    %224 = vector.shape_cast %223 : vector<16xf32> to vector<16x1xf32>
    %225 = vector.broadcast %224 : vector<16x1xf32> to vector<16x16xf32>
    %226 = arith.subf %222, %225 : vector<16x16xf32>
    %227 = math.exp %226 : vector<16x16xf32>
    %cst_166 = arith.constant dense<0.000000e+00> : vector<16xf32>
    %228 = vector.multi_reduction <add>, %227, %cst_166 [1] : vector<16x16xf32> to vector<16xf32>
    %229 = vector.shape_cast %228 : vector<16xf32> to vector<16x1xf32>
    %230 = tpu.reciprocal %229 {approx = true} : vector<16x1xf32> -> vector<16x1xf32>
    %231 = vector.broadcast %230 : vector<16x1xf32> to vector<16x16xf32>
    %232 = arith.mulf %227, %231 : vector<16x16xf32>
    %cst_167 = arith.constant dense<0.000000e+00> : vector<16x8xf32>
    %233 = tpu.matmul %232, %219, %cst_167 {dimension_numbers = #tpu.dot_dimension_numbers<[1], [0], [0], [1], [0, 0, 1, 1], [], []>} : vector<16x16xf32>, vector<16x8xf32>, vector<16x8xf32> -> vector<16x8xf32>
    %c1_168 = arith.constant 1 : index
    %c0_169 = arith.constant 0 : index
    %c0_170 = arith.constant 0 : index
    %c0_171 = arith.constant 0 : index
    %234 = vector.load %arg7[%c1_168, %c0_169, %c0_170, %c0_171] : memref<2x4x8x32xf32, #tpu.memory_space<vmem>>, vector<1x1x8x32xf32>
    %235 = vector.shape_cast %234 : vector<1x1x8x32xf32> to vector<8x32xf32>
    %cst_172 = arith.constant dense<0.000000e+00> : vector<16x32xf32>
    %236 = tpu.matmul %233, %235, %cst_172 {dimension_numbers = #tpu.dot_dimension_numbers<[1], [0], [0], [1], [0, 0, 1, 1], [], []>} : vector<16x8xf32>, vector<8x32xf32>, vector<16x32xf32> -> vector<16x32xf32>
    %237 = vector.broadcast %210 : vector<1x32xf32> to vector<16x32xf32>
    %238 = arith.addf %237, %236 : vector<16x32xf32>
    %c1_173 = arith.constant 1 : index
    %c1_174 = arith.constant 1 : index
    %c0_175 = arith.constant 0 : index
    %c0_176 = arith.constant 0 : index
    %239 = vector.load %arg4[%c1_173, %c1_174, %c0_175, %c0_176] : memref<2x4x32x8xf32, #tpu.memory_space<vmem>>, vector<1x1x32x8xf32>
    %240 = vector.shape_cast %239 : vector<1x1x32x8xf32> to vector<32x8xf32>
    %cst_177 = arith.constant dense<0.000000e+00> : vector<16x8xf32>
    %241 = tpu.matmul %208, %240, %cst_177 {dimension_numbers = #tpu.dot_dimension_numbers<[1], [0], [0], [1], [0, 0, 1, 1], [], []>} : vector<16x32xf32>, vector<32x8xf32>, vector<16x8xf32> -> vector<16x8xf32>
    %c1_178 = arith.constant 1 : index
    %c1_179 = arith.constant 1 : index
    %c0_180 = arith.constant 0 : index
    %c0_181 = arith.constant 0 : index
    %242 = vector.load %arg5[%c1_178, %c1_179, %c0_180, %c0_181] : memref<2x4x32x8xf32, #tpu.memory_space<vmem>>, vector<1x1x32x8xf32>
    %243 = vector.shape_cast %242 : vector<1x1x32x8xf32> to vector<32x8xf32>
    %cst_182 = arith.constant dense<0.000000e+00> : vector<16x8xf32>
    %244 = tpu.matmul %208, %243, %cst_182 {dimension_numbers = #tpu.dot_dimension_numbers<[1], [0], [0], [1], [0, 0, 1, 1], [], []>} : vector<16x32xf32>, vector<32x8xf32>, vector<16x8xf32> -> vector<16x8xf32>
    %c1_183 = arith.constant 1 : index
    %c1_184 = arith.constant 1 : index
    %c0_185 = arith.constant 0 : index
    %c0_186 = arith.constant 0 : index
    %245 = vector.load %arg6[%c1_183, %c1_184, %c0_185, %c0_186] : memref<2x4x32x8xf32, #tpu.memory_space<vmem>>, vector<1x1x32x8xf32>
    %246 = vector.shape_cast %245 : vector<1x1x32x8xf32> to vector<32x8xf32>
    %cst_187 = arith.constant dense<0.000000e+00> : vector<16x8xf32>
    %247 = tpu.matmul %208, %246, %cst_187 {dimension_numbers = #tpu.dot_dimension_numbers<[1], [0], [0], [1], [0, 0, 1, 1], [], []>} : vector<16x32xf32>, vector<32x8xf32>, vector<16x8xf32> -> vector<16x8xf32>
    %248 = tpu.transpose %244, [1, 0] : vector<16x8xf32> -> vector<8x16xf32>
    %cst_188 = arith.constant dense<0.000000e+00> : vector<16x16xf32>
    %249 = tpu.matmul %241, %248, %cst_188 {dimension_numbers = #tpu.dot_dimension_numbers<[1], [0], [0], [1], [0, 0, 1, 1], [], []>} : vector<16x8xf32>, vector<8x16xf32>, vector<16x16xf32> -> vector<16x16xf32>
    %250 = arith.addf %249, %1 : vector<16x16xf32>
    %cst_189 = arith.constant dense<0xFF800000> : vector<16xf32>
    %251 = vector.multi_reduction <maximumf>, %250, %cst_189 [1] : vector<16x16xf32> to vector<16xf32>
    %252 = vector.shape_cast %251 : vector<16xf32> to vector<16x1xf32>
    %253 = vector.broadcast %252 : vector<16x1xf32> to vector<16x16xf32>
    %254 = arith.subf %250, %253 : vector<16x16xf32>
    %255 = math.exp %254 : vector<16x16xf32>
    %cst_190 = arith.constant dense<0.000000e+00> : vector<16xf32>
    %256 = vector.multi_reduction <add>, %255, %cst_190 [1] : vector<16x16xf32> to vector<16xf32>
    %257 = vector.shape_cast %256 : vector<16xf32> to vector<16x1xf32>
    %258 = tpu.reciprocal %257 {approx = true} : vector<16x1xf32> -> vector<16x1xf32>
    %259 = vector.broadcast %258 : vector<16x1xf32> to vector<16x16xf32>
    %260 = arith.mulf %255, %259 : vector<16x16xf32>
    %cst_191 = arith.constant dense<0.000000e+00> : vector<16x8xf32>
    %261 = tpu.matmul %260, %247, %cst_191 {dimension_numbers = #tpu.dot_dimension_numbers<[1], [0], [0], [1], [0, 0, 1, 1], [], []>} : vector<16x16xf32>, vector<16x8xf32>, vector<16x8xf32> -> vector<16x8xf32>
    %c1_192 = arith.constant 1 : index
    %c1_193 = arith.constant 1 : index
    %c0_194 = arith.constant 0 : index
    %c0_195 = arith.constant 0 : index
    %262 = vector.load %arg7[%c1_192, %c1_193, %c0_194, %c0_195] : memref<2x4x8x32xf32, #tpu.memory_space<vmem>>, vector<1x1x8x32xf32>
    %263 = vector.shape_cast %262 : vector<1x1x8x32xf32> to vector<8x32xf32>
    %cst_196 = arith.constant dense<0.000000e+00> : vector<16x32xf32>
    %264 = tpu.matmul %261, %263, %cst_196 {dimension_numbers = #tpu.dot_dimension_numbers<[1], [0], [0], [1], [0, 0, 1, 1], [], []>} : vector<16x8xf32>, vector<8x32xf32>, vector<16x32xf32> -> vector<16x32xf32>
    %265 = arith.addf %238, %264 : vector<16x32xf32>
    %c1_197 = arith.constant 1 : index
    %c2_198 = arith.constant 2 : index
    %c0_199 = arith.constant 0 : index
    %c0_200 = arith.constant 0 : index
    %266 = vector.load %arg4[%c1_197, %c2_198, %c0_199, %c0_200] : memref<2x4x32x8xf32, #tpu.memory_space<vmem>>, vector<1x1x32x8xf32>
    %267 = vector.shape_cast %266 : vector<1x1x32x8xf32> to vector<32x8xf32>
    %cst_201 = arith.constant dense<0.000000e+00> : vector<16x8xf32>
    %268 = tpu.matmul %208, %267, %cst_201 {dimension_numbers = #tpu.dot_dimension_numbers<[1], [0], [0], [1], [0, 0, 1, 1], [], []>} : vector<16x32xf32>, vector<32x8xf32>, vector<16x8xf32> -> vector<16x8xf32>
    %c1_202 = arith.constant 1 : index
    %c2_203 = arith.constant 2 : index
    %c0_204 = arith.constant 0 : index
    %c0_205 = arith.constant 0 : index
    %269 = vector.load %arg5[%c1_202, %c2_203, %c0_204, %c0_205] : memref<2x4x32x8xf32, #tpu.memory_space<vmem>>, vector<1x1x32x8xf32>
    %270 = vector.shape_cast %269 : vector<1x1x32x8xf32> to vector<32x8xf32>
    %cst_206 = arith.constant dense<0.000000e+00> : vector<16x8xf32>
    %271 = tpu.matmul %208, %270, %cst_206 {dimension_numbers = #tpu.dot_dimension_numbers<[1], [0], [0], [1], [0, 0, 1, 1], [], []>} : vector<16x32xf32>, vector<32x8xf32>, vector<16x8xf32> -> vector<16x8xf32>
    %c1_207 = arith.constant 1 : index
    %c2_208 = arith.constant 2 : index
    %c0_209 = arith.constant 0 : index
    %c0_210 = arith.constant 0 : index
    %272 = vector.load %arg6[%c1_207, %c2_208, %c0_209, %c0_210] : memref<2x4x32x8xf32, #tpu.memory_space<vmem>>, vector<1x1x32x8xf32>
    %273 = vector.shape_cast %272 : vector<1x1x32x8xf32> to vector<32x8xf32>
    %cst_211 = arith.constant dense<0.000000e+00> : vector<16x8xf32>
    %274 = tpu.matmul %208, %273, %cst_211 {dimension_numbers = #tpu.dot_dimension_numbers<[1], [0], [0], [1], [0, 0, 1, 1], [], []>} : vector<16x32xf32>, vector<32x8xf32>, vector<16x8xf32> -> vector<16x8xf32>
    %275 = tpu.transpose %271, [1, 0] : vector<16x8xf32> -> vector<8x16xf32>
    %cst_212 = arith.constant dense<0.000000e+00> : vector<16x16xf32>
    %276 = tpu.matmul %268, %275, %cst_212 {dimension_numbers = #tpu.dot_dimension_numbers<[1], [0], [0], [1], [0, 0, 1, 1], [], []>} : vector<16x8xf32>, vector<8x16xf32>, vector<16x16xf32> -> vector<16x16xf32>
    %277 = arith.addf %276, %1 : vector<16x16xf32>
    %cst_213 = arith.constant dense<0xFF800000> : vector<16xf32>
    %278 = vector.multi_reduction <maximumf>, %277, %cst_213 [1] : vector<16x16xf32> to vector<16xf32>
    %279 = vector.shape_cast %278 : vector<16xf32> to vector<16x1xf32>
    %280 = vector.broadcast %279 : vector<16x1xf32> to vector<16x16xf32>
    %281 = arith.subf %277, %280 : vector<16x16xf32>
    %282 = math.exp %281 : vector<16x16xf32>
    %cst_214 = arith.constant dense<0.000000e+00> : vector<16xf32>
    %283 = vector.multi_reduction <add>, %282, %cst_214 [1] : vector<16x16xf32> to vector<16xf32>
    %284 = vector.shape_cast %283 : vector<16xf32> to vector<16x1xf32>
    %285 = tpu.reciprocal %284 {approx = true} : vector<16x1xf32> -> vector<16x1xf32>
    %286 = vector.broadcast %285 : vector<16x1xf32> to vector<16x16xf32>
    %287 = arith.mulf %282, %286 : vector<16x16xf32>
    %cst_215 = arith.constant dense<0.000000e+00> : vector<16x8xf32>
    %288 = tpu.matmul %287, %274, %cst_215 {dimension_numbers = #tpu.dot_dimension_numbers<[1], [0], [0], [1], [0, 0, 1, 1], [], []>} : vector<16x16xf32>, vector<16x8xf32>, vector<16x8xf32> -> vector<16x8xf32>
    %c1_216 = arith.constant 1 : index
    %c2_217 = arith.constant 2 : index
    %c0_218 = arith.constant 0 : index
    %c0_219 = arith.constant 0 : index
    %289 = vector.load %arg7[%c1_216, %c2_217, %c0_218, %c0_219] : memref<2x4x8x32xf32, #tpu.memory_space<vmem>>, vector<1x1x8x32xf32>
    %290 = vector.shape_cast %289 : vector<1x1x8x32xf32> to vector<8x32xf32>
    %cst_220 = arith.constant dense<0.000000e+00> : vector<16x32xf32>
    %291 = tpu.matmul %288, %290, %cst_220 {dimension_numbers = #tpu.dot_dimension_numbers<[1], [0], [0], [1], [0, 0, 1, 1], [], []>} : vector<16x8xf32>, vector<8x32xf32>, vector<16x32xf32> -> vector<16x32xf32>
    %292 = arith.addf %265, %291 : vector<16x32xf32>
    %c1_221 = arith.constant 1 : index
    %c3_222 = arith.constant 3 : index
    %c0_223 = arith.constant 0 : index
    %c0_224 = arith.constant 0 : index
    %293 = vector.load %arg4[%c1_221, %c3_222, %c0_223, %c0_224] : memref<2x4x32x8xf32, #tpu.memory_space<vmem>>, vector<1x1x32x8xf32>
    %294 = vector.shape_cast %293 : vector<1x1x32x8xf32> to vector<32x8xf32>
    %cst_225 = arith.constant dense<0.000000e+00> : vector<16x8xf32>
    %295 = tpu.matmul %208, %294, %cst_225 {dimension_numbers = #tpu.dot_dimension_numbers<[1], [0], [0], [1], [0, 0, 1, 1], [], []>} : vector<16x32xf32>, vector<32x8xf32>, vector<16x8xf32> -> vector<16x8xf32>
    %c1_226 = arith.constant 1 : index
    %c3_227 = arith.constant 3 : index
    %c0_228 = arith.constant 0 : index
    %c0_229 = arith.constant 0 : index
    %296 = vector.load %arg5[%c1_226, %c3_227, %c0_228, %c0_229] : memref<2x4x32x8xf32, #tpu.memory_space<vmem>>, vector<1x1x32x8xf32>
    %297 = vector.shape_cast %296 : vector<1x1x32x8xf32> to vector<32x8xf32>
    %cst_230 = arith.constant dense<0.000000e+00> : vector<16x8xf32>
    %298 = tpu.matmul %208, %297, %cst_230 {dimension_numbers = #tpu.dot_dimension_numbers<[1], [0], [0], [1], [0, 0, 1, 1], [], []>} : vector<16x32xf32>, vector<32x8xf32>, vector<16x8xf32> -> vector<16x8xf32>
    %c1_231 = arith.constant 1 : index
    %c3_232 = arith.constant 3 : index
    %c0_233 = arith.constant 0 : index
    %c0_234 = arith.constant 0 : index
    %299 = vector.load %arg6[%c1_231, %c3_232, %c0_233, %c0_234] : memref<2x4x32x8xf32, #tpu.memory_space<vmem>>, vector<1x1x32x8xf32>
    %300 = vector.shape_cast %299 : vector<1x1x32x8xf32> to vector<32x8xf32>
    %cst_235 = arith.constant dense<0.000000e+00> : vector<16x8xf32>
    %301 = tpu.matmul %208, %300, %cst_235 {dimension_numbers = #tpu.dot_dimension_numbers<[1], [0], [0], [1], [0, 0, 1, 1], [], []>} : vector<16x32xf32>, vector<32x8xf32>, vector<16x8xf32> -> vector<16x8xf32>
    %302 = tpu.transpose %298, [1, 0] : vector<16x8xf32> -> vector<8x16xf32>
    %cst_236 = arith.constant dense<0.000000e+00> : vector<16x16xf32>
    %303 = tpu.matmul %295, %302, %cst_236 {dimension_numbers = #tpu.dot_dimension_numbers<[1], [0], [0], [1], [0, 0, 1, 1], [], []>} : vector<16x8xf32>, vector<8x16xf32>, vector<16x16xf32> -> vector<16x16xf32>
    %304 = arith.addf %303, %1 : vector<16x16xf32>
    %cst_237 = arith.constant dense<0xFF800000> : vector<16xf32>
    %305 = vector.multi_reduction <maximumf>, %304, %cst_237 [1] : vector<16x16xf32> to vector<16xf32>
    %306 = vector.shape_cast %305 : vector<16xf32> to vector<16x1xf32>
    %307 = vector.broadcast %306 : vector<16x1xf32> to vector<16x16xf32>
    %308 = arith.subf %304, %307 : vector<16x16xf32>
    %309 = math.exp %308 : vector<16x16xf32>
    %cst_238 = arith.constant dense<0.000000e+00> : vector<16xf32>
    %310 = vector.multi_reduction <add>, %309, %cst_238 [1] : vector<16x16xf32> to vector<16xf32>
    %311 = vector.shape_cast %310 : vector<16xf32> to vector<16x1xf32>
    %312 = tpu.reciprocal %311 {approx = true} : vector<16x1xf32> -> vector<16x1xf32>
    %313 = vector.broadcast %312 : vector<16x1xf32> to vector<16x16xf32>
    %314 = arith.mulf %309, %313 : vector<16x16xf32>
    %cst_239 = arith.constant dense<0.000000e+00> : vector<16x8xf32>
    %315 = tpu.matmul %314, %301, %cst_239 {dimension_numbers = #tpu.dot_dimension_numbers<[1], [0], [0], [1], [0, 0, 1, 1], [], []>} : vector<16x16xf32>, vector<16x8xf32>, vector<16x8xf32> -> vector<16x8xf32>
    %c1_240 = arith.constant 1 : index
    %c3_241 = arith.constant 3 : index
    %c0_242 = arith.constant 0 : index
    %c0_243 = arith.constant 0 : index
    %316 = vector.load %arg7[%c1_240, %c3_241, %c0_242, %c0_243] : memref<2x4x8x32xf32, #tpu.memory_space<vmem>>, vector<1x1x8x32xf32>
    %317 = vector.shape_cast %316 : vector<1x1x8x32xf32> to vector<8x32xf32>
    %cst_244 = arith.constant dense<0.000000e+00> : vector<16x32xf32>
    %318 = tpu.matmul %315, %317, %cst_244 {dimension_numbers = #tpu.dot_dimension_numbers<[1], [0], [0], [1], [0, 0, 1, 1], [], []>} : vector<16x8xf32>, vector<8x32xf32>, vector<16x32xf32> -> vector<16x32xf32>
    %319 = arith.addf %292, %318 : vector<16x32xf32>
    %320 = arith.addf %182, %319 : vector<16x32xf32>
    %c1_245 = arith.constant 1 : index
    %c0_246 = arith.constant 0 : index
    %c0_247 = arith.constant 0 : index
    %321 = vector.load %arg9[%c1_245, %c0_246, %c0_247] : memref<2x1x32xf32, #tpu.memory_space<vmem>>, vector<1x1x32xf32>
    %322 = vector.shape_cast %321 : vector<1x1x32xf32> to vector<1x32xf32>
    %c1_248 = arith.constant 1 : index
    %c0_249 = arith.constant 0 : index
    %c0_250 = arith.constant 0 : index
    %323 = vector.load %arg10[%c1_248, %c0_249, %c0_250] : memref<2x1x32xf32, #tpu.memory_space<vmem>>, vector<1x1x32xf32>
    %324 = vector.shape_cast %323 : vector<1x1x32xf32> to vector<1x32xf32>
    %cst_251 = arith.constant dense<0.000000e+00> : vector<16xf32>
    %325 = vector.multi_reduction <add>, %320, %cst_251 [1] : vector<16x32xf32> to vector<16xf32>
    %326 = vector.shape_cast %325 : vector<16xf32> to vector<16x1xf32>
    %cst_252 = arith.constant 3.200000e+01 : f32
    %327 = vector.broadcast %cst_252 : f32 to vector<16x1xf32>
    %328 = arith.divf %326, %327 : vector<16x1xf32>
    %329 = vector.broadcast %328 : vector<16x1xf32> to vector<16x32xf32>
    %330 = arith.subf %320, %329 : vector<16x32xf32>
    %331 = arith.mulf %330, %330 : vector<16x32xf32>
    %cst_253 = arith.constant dense<0.000000e+00> : vector<16xf32>
    %332 = vector.multi_reduction <add>, %331, %cst_253 [1] : vector<16x32xf32> to vector<16xf32>
    %333 = vector.shape_cast %332 : vector<16xf32> to vector<16x1xf32>
    %cst_254 = arith.constant 3.200000e+01 : f32
    %334 = vector.broadcast %cst_254 : f32 to vector<16x1xf32>
    %335 = arith.divf %333, %334 : vector<16x1xf32>
    %336 = vector.broadcast %328 : vector<16x1xf32> to vector<16x32xf32>
    %337 = arith.subf %320, %336 : vector<16x32xf32>
    %cst_255 = arith.constant 9.99999974E-6 : f32
    %338 = vector.broadcast %cst_255 : f32 to vector<16x1xf32>
    %339 = arith.addf %335, %338 : vector<16x1xf32>
    %340 = math.rsqrt %339 : vector<16x1xf32>
    %341 = vector.broadcast %340 : vector<16x1xf32> to vector<16x32xf32>
    %342 = arith.mulf %337, %341 : vector<16x32xf32>
    %343 = vector.broadcast %322 : vector<1x32xf32> to vector<16x32xf32>
    %344 = arith.mulf %342, %343 : vector<16x32xf32>
    %345 = vector.broadcast %324 : vector<1x32xf32> to vector<16x32xf32>
    %346 = arith.addf %344, %345 : vector<16x32xf32>
    %c1_256 = arith.constant 1 : index
    %c0_257 = arith.constant 0 : index
    %c0_258 = arith.constant 0 : index
    %347 = vector.load %arg11[%c1_256, %c0_257, %c0_258] : memref<2x32x128xf32, #tpu.memory_space<vmem>>, vector<1x32x128xf32>
    %348 = vector.shape_cast %347 : vector<1x32x128xf32> to vector<32x128xf32>
    %cst_259 = arith.constant dense<0.000000e+00> : vector<16x128xf32>
    %349 = tpu.matmul %346, %348, %cst_259 {dimension_numbers = #tpu.dot_dimension_numbers<[1], [0], [0], [1], [0, 0, 1, 1], [], []>} : vector<16x32xf32>, vector<32x128xf32>, vector<16x128xf32> -> vector<16x128xf32>
    %c1_260 = arith.constant 1 : index
    %c0_261 = arith.constant 0 : index
    %c0_262 = arith.constant 0 : index
    %350 = vector.load %arg12[%c1_260, %c0_261, %c0_262] : memref<2x1x128xf32, #tpu.memory_space<vmem>>, vector<1x1x128xf32>
    %351 = vector.shape_cast %350 : vector<1x1x128xf32> to vector<1x128xf32>
    %352 = vector.broadcast %351 : vector<1x128xf32> to vector<16x128xf32>
    %353 = arith.addf %349, %352 : vector<16x128xf32>
    %cst_263 = arith.constant 0.000000e+00 : f32
    %354 = vector.broadcast %cst_263 : f32 to vector<16x128xf32>
    %355 = arith.maximumf %353, %354 : vector<16x128xf32>
    %c1_264 = arith.constant 1 : index
    %c0_265 = arith.constant 0 : index
    %c0_266 = arith.constant 0 : index
    %356 = vector.load %arg13[%c1_264, %c0_265, %c0_266] : memref<2x128x32xf32, #tpu.memory_space<vmem>>, vector<1x128x32xf32>
    %357 = vector.shape_cast %356 : vector<1x128x32xf32> to vector<128x32xf32>
    %cst_267 = arith.constant dense<0.000000e+00> : vector<16x32xf32>
    %358 = tpu.matmul %355, %357, %cst_267 {dimension_numbers = #tpu.dot_dimension_numbers<[1], [0], [0], [1], [0, 0, 1, 1], [], []>} : vector<16x128xf32>, vector<128x32xf32>, vector<16x32xf32> -> vector<16x32xf32>
    %c1_268 = arith.constant 1 : index
    %c0_269 = arith.constant 0 : index
    %c0_270 = arith.constant 0 : index
    %359 = vector.load %arg14[%c1_268, %c0_269, %c0_270] : memref<2x1x32xf32, #tpu.memory_space<vmem>>, vector<1x1x32xf32>
    %360 = vector.shape_cast %359 : vector<1x1x32xf32> to vector<1x32xf32>
    %361 = vector.broadcast %360 : vector<1x32xf32> to vector<16x32xf32>
    %362 = arith.addf %358, %361 : vector<16x32xf32>
    %363 = arith.addf %320, %362 : vector<16x32xf32>
    %c0_271 = arith.constant 0 : index
    %c0_272 = arith.constant 0 : index
    %364 = vector.load %arg15[%c0_271, %c0_272] : memref<1x32xf32, #tpu.memory_space<vmem>>, vector<1x32xf32>
    %c0_273 = arith.constant 0 : index
    %c0_274 = arith.constant 0 : index
    %365 = vector.load %arg16[%c0_273, %c0_274] : memref<1x32xf32, #tpu.memory_space<vmem>>, vector<1x32xf32>
    %cst_275 = arith.constant dense<0.000000e+00> : vector<16xf32>
    %366 = vector.multi_reduction <add>, %363, %cst_275 [1] : vector<16x32xf32> to vector<16xf32>
    %367 = vector.shape_cast %366 : vector<16xf32> to vector<16x1xf32>
    %cst_276 = arith.constant 3.200000e+01 : f32
    %368 = vector.broadcast %cst_276 : f32 to vector<16x1xf32>
    %369 = arith.divf %367, %368 : vector<16x1xf32>
    %370 = vector.broadcast %369 : vector<16x1xf32> to vector<16x32xf32>
    %371 = arith.subf %363, %370 : vector<16x32xf32>
    %372 = arith.mulf %371, %371 : vector<16x32xf32>
    %cst_277 = arith.constant dense<0.000000e+00> : vector<16xf32>
    %373 = vector.multi_reduction <add>, %372, %cst_277 [1] : vector<16x32xf32> to vector<16xf32>
    %374 = vector.shape_cast %373 : vector<16xf32> to vector<16x1xf32>
    %cst_278 = arith.constant 3.200000e+01 : f32
    %375 = vector.broadcast %cst_278 : f32 to vector<16x1xf32>
    %376 = arith.divf %374, %375 : vector<16x1xf32>
    %377 = vector.broadcast %369 : vector<16x1xf32> to vector<16x32xf32>
    %378 = arith.subf %363, %377 : vector<16x32xf32>
    %cst_279 = arith.constant 9.99999974E-6 : f32
    %379 = vector.broadcast %cst_279 : f32 to vector<16x1xf32>
    %380 = arith.addf %376, %379 : vector<16x1xf32>
    %381 = math.rsqrt %380 : vector<16x1xf32>
    %382 = vector.broadcast %381 : vector<16x1xf32> to vector<16x32xf32>
    %383 = arith.mulf %378, %382 : vector<16x32xf32>
    %384 = vector.broadcast %364 : vector<1x32xf32> to vector<16x32xf32>
    %385 = arith.mulf %383, %384 : vector<16x32xf32>
    %386 = vector.broadcast %365 : vector<1x32xf32> to vector<16x32xf32>
    %387 = arith.addf %385, %386 : vector<16x32xf32>
    %c0_280 = arith.constant 0 : index
    %c0_281 = arith.constant 0 : index
    %388 = vector.load %arg17[%c0_280, %c0_281] : memref<32x128xf32, #tpu.memory_space<vmem>>, vector<32x128xf32>
    %cst_282 = arith.constant dense<0.000000e+00> : vector<16x128xf32>
    %389 = tpu.matmul %387, %388, %cst_282 {dimension_numbers = #tpu.dot_dimension_numbers<[1], [0], [0], [1], [0, 0, 1, 1], [], []>} : vector<16x32xf32>, vector<32x128xf32>, vector<16x128xf32> -> vector<16x128xf32>
    %c0_283 = arith.constant 0 : index
    %c0_284 = arith.constant 0 : index
    %390 = vector.load %arg18[%c0_283, %c0_284] : memref<1x128xf32, #tpu.memory_space<vmem>>, vector<1x128xf32>
    %391 = vector.broadcast %390 : vector<1x128xf32> to vector<16x128xf32>
    %392 = arith.addf %389, %391 : vector<16x128xf32>
    %c0_285 = arith.constant 0 : index
    %c0_286 = arith.constant 0 : index
    %393 = vector.load %arg19[%c0_285, %c0_286] : memref<16x128xf32, #tpu.memory_space<vmem>>, vector<16x128xf32>
    tpu.vector_store %arg19[%c0_285, %c0_286], %392 {strides = array<i32>} : memref<16x128xf32, #tpu.memory_space<vmem>>, vector<16x128xf32>,
    return
  }
}

</mosaic_0001>

<bundles_post_ra>
// kernel: forward.1
= control target key start
LH: loop header
LB: loop body
LE: loop exit
PB: predicated region body
PF: predicated region fallthrough
CT: control target
= control target key end

     0   :  { %vm68_vm0 = vcmask 261120   ;;  %vm356_vm1 = vcmask 64512   ;;  %vm444_vm3 = vcmask 130048   ;;  %s7402_s0 = inlined_call_operand.vmem [shape: f32[16,32], index: 0, kind: input, shape index: {}]   ;;  %s7403_s4 = inlined_call_operand.vmem [shape: f32[2,4,32,8], index: 4, kind: input, shape index: {}]   ;;  %s7404_s5 = inlined_call_operand.vmem [shape: f32[2,4,32,8], index: 5, kind: input, shape index: {}]   ;;  %s7405_s2 = inlined_call_operand.vmem [shape: f32[2,1,32], index: 2, kind: input, shape index: {}]   ;;  %s7406_s3 = inlined_call_operand.vmem [shape: f32[2,1,32], index: 3, kind: input, shape index: {}]   ;;  %s7407_s6 = inlined_call_operand.vmem [shape: f32[2,4,32,8], index: 6, kind: input, shape index: {}]   ;;  %s7408_s1 = inlined_call_operand.vmem [shape: f32[16,16], index: 1, kind: input, shape index: {}]   ;;  %s7409_s7 = inlined_call_operand.vmem [shape: f32[2,4,8,32], index: 7, kind: input, shape index: {}]   ;;  %s7410_s8 = inlined_call_operand.vmem [shape: f32[2,1,32], index: 8, kind: input, shape index: {}]   ;;  %s7411_s11 = inlined_call_operand.vmem [shape: f32[2,32,128], index: 11, kind: input, shape index: {}]   ;;  %s7412_s13 = inlined_call_operand.vmem [shape: f32[2,128,32], index: 13, kind: input, shape index: {}]   ;;  %s7413_s9 = inlined_call_operand.vmem [shape: f32[2,1,32], index: 9, kind: input, shape index: {}]   ;;  %s7414_s10 = inlined_call_operand.vmem [shape: f32[2,1,32], index: 10, kind: input, shape index: {}]   ;;  %s7415_s12 = inlined_call_operand.vmem [shape: f32[2,1,128], index: 12, kind: input, shape index: {}]   ;;  %s7416_s14 = inlined_call_operand.vmem [shape: f32[2,1,32], index: 14, kind: input, shape index: {}]   ;;  %s7417_s17 = inlined_call_operand.vmem [shape: f32[32,128], index: 17, kind: input, shape index: {}]   ;;  %s7418_s15 = inlined_call_operand.vmem [shape: f32[1,32], index: 15, kind: input, shape index: {}]   ;;  %s7419_s16 = inlined_call_operand.vmem [shape: f32[1,32], index: 16, kind: input, shape index: {}]   ;;  %s7420_s18 = inlined_call_operand.vmem [shape: f32[1,128], index: 18, kind: input, shape index: {}]   ;;  %s7421_s19 = inlined_call_operand.vmem [shape: f32[16,128], index: 19, kind: output, shape index: {}]  }
   0x1   :  { %7426 = sst [smem:[#allocation2_spill]] %s7402_s0  ;;  %v4932_v32 = vld [vmem:[%s7406_s3] ss:$0 sm:$0xff]  ;;  %v278_v43 = vld [vmem:[%s7407_s6 + $0x8] sm:$0xff]  ;;  %v279_v45 = vld [vmem:[%s7407_s6 + $0x10] sm:$0xff] }
   0x2   :  { %7427 = sst [smem:[#allocation3_spill]] %s7403_s4  ;;  %s7430_s20 = sld [smem:[#allocation2_spill]]  ;;  %v277_v42 = vld [vmem:[%s7407_s6] sm:$0xff]  ;;  %v280_v46 = vld [vmem:[%s7407_s6 + $0x18] sm:$0xff]  ;;  %vm6630_vm2 = vmpackc.low %vm356_vm1, %vm356_vm1 }
   0x3   :  { %7428 = sst [smem:[#allocation4_spill]] %s7404_s5  ;;  %s7431_s23 = sld [smem:[#allocation3_spill]]  ;;  %v6005_v44 = vpack.c.bf16 %v278_v43, %v277_v42  ;;  %v6009_v47 = vpack.c.bf16 %v280_v46, %v279_v45  ;;  %v6642_v57 = vld [vmem:[%s7408_s1 + $0x8] sm:$0xff]  ;;  %v6647_v58 = vld [vmem:[%s7408_s1] sm:$0xff] }
   0x4   :  { %7429 = sst [smem:[#allocation5_spill]] %s7405_s2  ;;  %s7432_s30 = sld [smem:[#allocation4_spill]] }
   0x5   :  { %s7433_s5 = sld [smem:[#allocation5_spill]] }
   0x8   :  { %v6554_v0 = vld [vmem:[%s7430_s20] sm:$0xff]  ;;  %v6559_v1 = vld [vmem:[%s7430_s20 + $0x8] sm:$0xff] }
   0x9   :  { %v69_v2 = vsel %vm68_vm0, %v6554_v0, 0.0  ;;  %v72_v3 = vsel %vm68_vm0, %v6559_v1, 0.0  ;;  %v113_v14 = vld [vmem:[%s7431_s23] sm:$0xff]  ;;  %v114_v15 = vld [vmem:[%s7431_s23 + $0x8] sm:$0xff]  ;;  %v115_v17 = vld [vmem:[%s7431_s23 + $0x10] sm:$0xff] }
   0xa   :  { %70 = vadd.xlane.f32.xlu0 %v69_v2  ;;  %v5989_v16 = vpack.c.bf16 %v114_v15, %v113_v14  ;;  %v116_v18 = vld [vmem:[%s7431_s23 + $0x18] sm:$0xff]  ;;  %v198_v20 = vld [vmem:[%s7432_s30] sm:$0xff]  ;;  %v199_v21 = vld [vmem:[%s7432_s30 + $0x8] sm:$0xff] }
   0xb   :  { %v5993_v19 = vpack.c.bf16 %v116_v18, %v115_v17  ;;  %v5997_v22 = vpack.c.bf16 %v199_v21, %v198_v20  ;;  %v4931_v30 = vld [vmem:[%s7433_s5] ss:$0 sm:$0xff]  ;;  %v200_v37 = vld [vmem:[%s7432_s30 + $0x10] sm:$0xff]  ;;  %v201_v38 = vld [vmem:[%s7432_s30 + $0x18] sm:$0xff] }
   0xc   :  { %5990 = vmatprep.subr.bf16.mxu0 %v5989_v16  ;;  %v6001_v41 = vpack.c.bf16 %v201_v38, %v200_v37  ;;  %v4949_v14 = vld [vmem:[%s7431_s23 + $0x28] sm:$0xff]  ;;  %v4950_v20 = vld [vmem:[%s7431_s23 + $0x30] sm:$0xff]  ;;  %v4951_v21 = vld [vmem:[%s7431_s23 + $0x38] sm:$0xff] }
   0xd   :  { %5992 = vmatpush3.bf16.msra.mxu0 %v5989_v16  ;;  %v548_v16 = vld [vmem:[%s7409_s7] sm:$0xff]  ;;  %v4957_v37 = vld [vmem:[%s7432_s30 + $0x38] sm:$0xff] }
   0xe   :  { %73 = vadd.xlane.f32.xlu0 %v72_v3  ;;  %5994 = vmatprep.subr.bf16.mxu0 %v5993_v19 }
  0x11   :  { %5996 = vmatpush3.bf16.msra.mxu0 %v5993_v19 }
  0x12   :  { %5998 = vmatprep.subr.bf16.mxu0 %v5997_v22 }
  0x97   :  { %v71_v4 = vpop.xlane.xlu0 %70 }
  0x98   :  { %v76_v5 = vmul.f32 0.03125, %v71_v4 }
  0x9a   :  { %v78_v6 = vsub.f32 %v6554_v0, %v76_v5 }
  0x9b   :  { %v74_v7 = vpop.xlane.xlu0 %73 }
  0x9c   :  { %v77_v8 = vmul.f32 0.03125, %v74_v7  ;;  %v80_v9 = vmul.f32 %v78_v6, %v78_v6 }
  0x9e   :  { %v79_v10 = vsub.f32 %v6559_v1, %v77_v8  ;;  %v82_v11 = vsel %vm68_vm0, %v80_v9, 0.0 }
  0x9f   :  { %83 = vadd.xlane.f32.xlu1 %v82_v11 }
  0xa0   :  { %v81_v12 = vmul.f32 %v79_v10, %v79_v10 }
  0xa2   :  { %v85_v13 = vsel %vm68_vm0, %v81_v12, 0.0 }
  0xa3   :  { %86 = vadd.xlane.f32.xlu1 %v85_v13  ;;  %v4948_v13 = vld [vmem:[%s7431_s23 + $0x20] sm:$0xff] }
  0xa4   :  { %v6023_v15 = vpack.c.bf16 %v4949_v14, %v4948_v13  ;;  %v4977_v14 = vld [vmem:[%s7431_s23 + $0x50] sm:$0xff] }
 0x12c   :  { %v84_v23 = vpop.xlane.xlu1 %83 }
 0x12d   :  { %v88_v24 = vmul.f32 0.03125, %v84_v23 }
 0x12f   :  { %v90_v25 = vadd.f32 1e-05, %v88_v24 }
 0x130   :  { %v87_v26 = vpop.xlane.xlu1 %86 }
 0x131   :  { %6365 = vrsqrt.f32 %v90_v25  ;;  %v89_v27 = vmul.f32 0.03125, %v87_v26  ;;  %v6027_v25 = vpack.c.bf16 %v4951_v21, %v4950_v20  ;;  %v4960_v26 = vld [vmem:[%s7407_s6 + $0x20] sm:$0xff]  ;;  %v4988_v21 = vld [vmem:[%s7407_s6 + $0x48] sm:$0xff] }
 0x132   :  { %v4987_v20 = vld [vmem:[%s7407_s6 + $0x40] sm:$0xff] }
 0x133   :  { %v91_v28 = vadd.f32 1e-05, %v89_v27  ;;  %v4961_v27 = vld [vmem:[%s7407_s6 + $0x28] sm:$0xff] }
 0x135   :  { %6367 = vrsqrt.f32 %v91_v28  ;;  %v6039_v28 = vpack.c.bf16 %v4961_v27, %v4960_v26  ;;  %v4981_v26 = vld [vmem:[%s7432_s30 + $0x40] sm:$0xff]  ;;  %v4982_v27 = vld [vmem:[%s7432_s30 + $0x48] sm:$0xff] }
 0x13b   :  { %v6366_v29 = vpop.eup %6365 }
 0x13c   :  { %v94_v31 = vmul.f32 %v6366_v29, %v78_v6  ;;  %v4962_v29 = vld [vmem:[%s7407_s6 + $0x30] sm:$0xff] }
 0x13e   :  { %v102_v33 = vmul.f32 %v4931_v30, %v94_v31 }
 0x13f   :  { %v6368_v34 = vpop.eup %6367 }
 0x140   :  { %v6593_v35 = vadd.f32 %v4932_v32, %v102_v33  ;;  %v95_v36 = vmul.f32 %v6368_v34, %v79_v10  ;;  %v4955_v33 = vld [vmem:[%s7432_s30 + $0x28] sm:$0xff] }
 0x142   :  { %v103_v39 = vmul.f32 %v4931_v30, %v95_v36  ;;  %5478 = vmatprep.mubr.msk.f32.mxu0 %vm68_vm0, %v6593_v35  ;;  %v4963_v30 = vld [vmem:[%s7407_s6 + $0x38] sm:$0xff]  ;;  %v4956_v36 = vld [vmem:[%s7432_s30 + $0x30] sm:$0xff] }
 0x143   :  { %v6043_v31 = vpack.c.bf16 %v4963_v30, %v4962_v29  ;;  %v4983_v29 = vld [vmem:[%s7432_s30 + $0x50] sm:$0xff]  ;;  %v4984_v30 = vld [vmem:[%s7432_s30 + $0x58] sm:$0xff] }
 0x144   :  { %v6603_v40 = vadd.f32 %v4932_v32, %v103_v39  ;;  %v4954_v32 = vld [vmem:[%s7432_s30 + $0x20] sm:$0xff] }
 0x145   :  { %v6031_v34 = vpack.c.bf16 %v4955_v33, %v4954_v32  ;;  %v6069_v33 = vpack.c.bf16 %v4984_v30, %v4983_v29 }
 0x146   :  { %5479 = vmatmul.mubr.msk.f32.vlgmr.msra.gmra.mrb[0].mxu0 %vm68_vm0, %v6603_v40 }
 0x147   :  { %6000 = vmatpush3.bf16.msra.mxu0 %v5997_v22  ;;  %5489 = vmatprep.mubr.msk.f32.mxu0 %vm68_vm0, %v6593_v35 }
 0x148   :  { %6002 = vmatprep.subr.bf16.mxu0 %v6001_v41 }
 0x14b   :  { %6004 = vmatpush3.bf16.msra.mxu0 %v6001_v41  ;;  %v6035_v41 = vpack.c.bf16 %v4957_v37, %v4956_v36 }
 0x14c   :  { %6006 = vmatprep.subr.bf16.mxu0 %v6005_v44 }
 0x14e   :  { %5490 = vmatmul.mubr.msk.f32.vlgmr.msra.gmra.mrb[2].mxu0 %vm68_vm0, %v6603_v40 }
 0x14f   :  { %6008 = vmatpush3.bf16.msra.mxu0 %v6005_v44  ;;  %5500 = vmatprep.mubr.msk.f32.mxu0 %vm68_vm0, %v6593_v35 }
 0x150   :  { %6010 = vmatprep.subr.bf16.mxu0 %v6009_v47 }
 0x153   :  { %6012 = vmatpush3.bf16.msra.mxu0 %v6009_v47 }
 0x156   :  { %5501 = vmatmul.mubr.msk.f32.vlgmr.msra.gmra.mrb[4].mxu0 %vm68_vm0, %v6603_v40 }
 0x219   :  { %v5480_v48 = vpop.f32.mrb[0].mxu0 }
 0x21a   :  { %v189_v49 = vpop.f32.mrb[1].mxu0 }
 0x21b   :  { %5507 = vmatprep.mubr.msk.f32.mxu1 %vm356_vm1, %v189_v49 }
 0x221   :  { %v5491_v50 = vpop.f32.mrb[2].mxu0 }
 0x222   :  { %v268_v51 = vpop.f32.mrb[3].mxu0 }
 0x223   :  { %v6013_v53 = vpack.c.bf16 %v5491_v50, %v268_v51 }
 0x225   :  { %6015 = vmatprep.subr.msk.bf16.mxu1 %vm6630_vm2, %v6013_v53 }
 0x226   :  { %6018 = vmatpush3.bf16.xpose.msk.msra.mxu1 %vm6630_vm2, %v6013_v53 }
 0x227   :  { %5517 = vmatprep.subr.mxu1 %v548_v16 }
 0x229   :  { %v5502_v54 = vpop.f32.mrb[4].mxu0 }
 0x22a   :  { %v347_v55 = vpop.f32.mrb[5].mxu0 }
 0x22b   :  { %v6019_v56 = vpack.c.bf16 %v5502_v54, %v347_v55 }
 0x22d   :  { %5508 = vmatmul.mubr.msk.f32.vlgmr.msra.gmra.mrb[0].mxu1 %vm356_vm1, %v5480_v48  ;;  %6020 = vmatprep.subr.bf16.mxu0 %v6019_v56 }
 0x22e   :  { %6022 = vmatpush3.bf16.msra.mxu0 %v6019_v56  ;;  %5518 = vmatpush3.msra.mxu1 %v548_v16 }
 0x22f   :  { %6024 = vmatprep.subr.bf16.mxu0 %v6023_v15  ;;  %6032 = vmatprep.subr.bf16.mxu1 %v6031_v34 }
 0x300   :  { %v5509_v59 = vpop.f32.mrb[0].mxu1 }
 0x301   :  { %v441_v60 = vadd.f32 %v5509_v59, %v6642_v57  ;;  %v435_v61 = vpop.f32.mrb[1].mxu1 }
 0x302   :  { %v436_v62 = vadd.f32 %v435_v61, %v6647_v58 }
 0x303   :  { %v448_v63 = vsel %vm444_vm3, %v441_v60, -inf }
 0x304   :  { %449 = vmax.xlane.f32.xlu1 %v448_v63  ;;  %v445_v2 = vsel %vm444_vm3, %v436_v62, -inf }
 0x305   :  { %446 = vmax.xlane.f32.xlu0 %v445_v2 }
 0x391   :  { %v450_v3 = vpop.xlane.xlu1 %449 }
 0x392   :  { %v452_v4 = vsub.f32 %v441_v60, %v450_v3  ;;  %v447_v5 = vpop.xlane.xlu0 %446 }
 0x393   :  { %v451_v6 = vsub.f32 %v436_v62, %v447_v5 }
 0x394   :  { %v455_v7 = vmul.f32 1.442695, %v452_v4 }
 0x395   :  { %v453_v8 = vmul.f32 1.442695, %v451_v6 }
 0x396   :  { %6369 = vpow2.f32 %v455_v7  ;;  %v4975_v7 = vld [vmem:[%s7431_s23 + $0x40] sm:$0xff] }
 0x397   :  { %6371 = vpow2.f32 %v453_v8  ;;  %v4976_v8 = vld [vmem:[%s7431_s23 + $0x48] sm:$0xff] }
 0x3a0   :  { %v6370_v9 = vpop.eup %6369 }
 0x3a1   :  { %v6372_v10 = vpop.eup %6371  ;;  %v460_v11 = vsel %vm444_vm3, %v6370_v9, 0.0 }
 0x3a2   :  { %461 = vadd.xlane.f32.xlu1 %v460_v11  ;;  %v457_v12 = vsel %vm444_vm3, %v6372_v10, 0.0 }
 0x3a3   :  { %458 = vadd.xlane.f32.xlu0 %v457_v12 }
 0x42f   :  { %v462_v17 = vpop.xlane.xlu1 %461 }
 0x430   :  { %6373 = vrcp.f32 %v462_v17  ;;  %v459_v18 = vpop.xlane.xlu0 %458 }
 0x431   :  { %6375 = vrcp.f32 %v459_v18 }
 0x43a   :  { %v6374_v19 = vpop.eup %6373 }
 0x43b   :  { %v6376_v22 = vpop.eup %6375  ;;  %v466_v24 = vmul.f32 %v6374_v19, %v6370_v9  ;;  %v6057_v9 = vpack.c.bf16 %v4976_v8, %v4975_v7  ;;  %v5004_v8 = vld [vmem:[%s7431_s23 + $0x70] sm:$0xff] }
 0x43c   :  { %v465_v23 = vmul.f32 %v6376_v22, %v6372_v10  ;;  %v4972_v10 = vld [vmem:[%s7409_s7 + $0x8] sm:$0xff]  ;;  %v6073_v22 = vpack.c.bf16 %v4988_v21, %v4987_v20  ;;  %v5008_v20 = vld [vmem:[%s7432_s30 + $0x60] sm:$0xff] }
 0x43d   :  { %v5009_v21 = vld [vmem:[%s7432_s30 + $0x68] sm:$0xff] }
 0x43e   :  { %5514 = vmatprep.mubr.msk.f32.mxu0 %vm444_vm3, %v465_v23  ;;  %v4989_v23 = vld [vmem:[%s7407_s6 + $0x50] sm:$0xff] }
 0x43f   :  { %5515 = vmatmul.mubr.msk.f32.vlgmr.msra.gmra.mrb[6].mxu0 %vm444_vm3, %v466_v24  ;;  %v4990_v24 = vld [vmem:[%s7407_s6 + $0x58] sm:$0xff] }
 0x440   :  { %6026 = vmatpush3.bf16.msra.mxu0 %v6023_v15  ;;  %5530 = vmatprep.mubr.msk.f32.mxu0 %vm68_vm0, %v6593_v35  ;;  %v4978_v15 = vld [vmem:[%s7431_s23 + $0x58] sm:$0xff] }
 0x441   :  { %6028 = vmatprep.subr.bf16.mxu0 %v6027_v25  ;;  %v6061_v19 = vpack.c.bf16 %v4978_v15, %v4977_v14  ;;  %v5014_v14 = vld [vmem:[%s7407_s6 + $0x60] sm:$0xff]  ;;  %v5015_v15 = vld [vmem:[%s7407_s6 + $0x68] sm:$0xff] }
 0x444   :  { %6030 = vmatpush3.bf16.msra.mxu0 %v6027_v25  ;;  %v6077_v25 = vpack.c.bf16 %v4990_v24, %v4989_v23  ;;  %v5010_v23 = vld [vmem:[%s7432_s30 + $0x70] sm:$0xff]  ;;  %v5011_v24 = vld [vmem:[%s7432_s30 + $0x78] sm:$0xff] }
 0x445   :  { %6040 = vmatprep.subr.bf16.mxu0 %v6039_v28 }
 0x447   :  { %5531 = vmatmul.mubr.msk.f32.vlgmr.msra.gmra.mrb[8].mxu0 %vm68_vm0, %v6603_v40 }
 0x448   :  { %6042 = vmatpush3.bf16.msra.mxu0 %v6039_v28  ;;  %5552 = vmatprep.mubr.msk.f32.mxu0 %vm68_vm0, %v6593_v35  ;;  %v6065_v28 = vpack.c.bf16 %v4982_v27, %v4981_v26  ;;  %v6103_v27 = vpack.c.bf16 %v5011_v24, %v5010_v23  ;;  %v2323_v23 = vld [vmem:[%s7412_s13] sm:$0xff]  ;;  %v2324_v24 = vld [vmem:[%s7412_s13 + $0x8] sm:$0xff] }
 0x449   :  { %6044 = vmatprep.subr.bf16.mxu0 %v6043_v31 }
 0x44c   :  { %6046 = vmatpush3.bf16.msra.mxu0 %v6043_v31 }
 0x44f   :  { %5553 = vmatmul.mubr.msk.f32.vlgmr.msra.gmra.mrb[10].mxu0 %vm68_vm0, %v6603_v40 }
 0x512   :  { %v5516_v38 = vpop.f32.mrb[6].mxu0 }
 0x513   :  { %v539_v39 = vpop.f32.mrb[7].mxu0 }
 0x514   :  { %5519 = vmatprep.mubr.msk.f32.mxu1 %vm356_vm1, %v539_v39 }
 0x515   :  { %5520 = vmatmul.mubr.msk.f32.vlgmr.msra.gmra.mrb[2].mxu1 %vm356_vm1, %v5516_v38 }
 0x516   :  { %6034 = vmatpush3.bf16.msra.mxu1 %v6031_v34  ;;  %5541 = vmatprep.mubr.msk.f32.mxu1 %vm68_vm0, %v6593_v35 }
 0x517   :  { %6036 = vmatprep.subr.bf16.mxu1 %v6035_v41 }
 0x51a   :  { %v5532_v42 = vpop.f32.mrb[8].mxu0  ;;  %6038 = vmatpush3.bf16.msra.mxu1 %v6035_v41 }
 0x51b   :  { %v709_v43 = vpop.f32.mrb[9].mxu0 }
 0x51d   :  { %5542 = vmatmul.mubr.msk.f32.vlgmr.msra.gmra.mrb[4].mxu1 %vm68_vm0, %v6603_v40 }
 0x51e   :  { %5559 = vmatprep.mubr.msk.f32.mxu1 %vm356_vm1, %v709_v43 }
 0x522   :  { %v5554_v44 = vpop.f32.mrb[10].mxu0 }
 0x523   :  { %v869_v45 = vpop.f32.mrb[11].mxu0 }
 0x524   :  { %v6053_v46 = vpack.c.bf16 %v5554_v44, %v869_v45 }
 0x526   :  { %6054 = vmatprep.subr.bf16.mxu0 %v6053_v46 }
 0x527   :  { %6056 = vmatpush3.bf16.msra.mxu0 %v6053_v46 }
 0x528   :  { %6058 = vmatprep.subr.bf16.mxu0 %v6057_v9 }
 0x5f0   :  { %v5543_v47 = vpop.f32.mrb[4].mxu1 }
 0x5f1   :  { %v789_v48 = vpop.f32.mrb[5].mxu1 }
 0x5f2   :  { %v6047_v49 = vpack.c.bf16 %v5543_v47, %v789_v48 }
 0x5f4   :  { %6049 = vmatprep.subr.msk.bf16.mxu1 %vm6630_vm2, %v6047_v49 }
 0x5f5   :  { %6052 = vmatpush3.bf16.xpose.msk.msra.mxu1 %vm6630_vm2, %v6047_v49 }
 0x5f6   :  { %5569 = vmatprep.subr.mxu1 %v4972_v10 }
 0x5fc   :  { %5560 = vmatmul.mubr.msk.f32.vlgmr.msra.gmra.mrb[6].mxu1 %vm356_vm1, %v5532_v42 }
 0x5fd   :  { %5570 = vmatpush3.msra.mxu1 %v4972_v10 }
 0x5fe   :  { %6066 = vmatprep.subr.bf16.mxu1 %v6065_v28 }
 0x6cf   :  { %v5561_v50 = vpop.f32.mrb[6].mxu1 }
 0x6d0   :  { %v962_v51 = vadd.f32 %v5561_v50, %v6642_v57  ;;  %v956_v53 = vpop.f32.mrb[7].mxu1 }
 0x6d1   :  { %v957_v54 = vadd.f32 %v956_v53, %v6647_v58 }
 0x6d2   :  { %v968_v55 = vsel %vm444_vm3, %v962_v51, -inf }
 0x6d3   :  { %969 = vmax.xlane.f32.xlu1 %v968_v55  ;;  %v965_v56 = vsel %vm444_vm3, %v957_v54, -inf }
 0x6d4   :  { %966 = vmax.xlane.f32.xlu0 %v965_v56 }
 0x760   :  { %v970_v59 = vpop.xlane.xlu1 %969 }
 0x761   :  { %v972_v60 = vsub.f32 %v962_v51, %v970_v59  ;;  %v967_v61 = vpop.xlane.xlu0 %966 }
 0x762   :  { %v971_v62 = vsub.f32 %v957_v54, %v967_v61 }
 0x763   :  { %v975_v63 = vmul.f32 1.442695, %v972_v60 }
 0x764   :  { %v973_v2 = vmul.f32 1.442695, %v971_v62 }
 0x765   :  { %6377 = vpow2.f32 %v975_v63  ;;  %v5002_v63 = vld [vmem:[%s7431_s23 + $0x60] sm:$0xff] }
 0x766   :  { %6379 = vpow2.f32 %v973_v2  ;;  %v5003_v2 = vld [vmem:[%s7431_s23 + $0x68] sm:$0xff] }
 0x76f   :  { %v6378_v3 = vpop.eup %6377 }
 0x770   :  { %v6380_v4 = vpop.eup %6379  ;;  %v980_v5 = vsel %vm444_vm3, %v6378_v3, 0.0 }
 0x771   :  { %981 = vadd.xlane.f32.xlu1 %v980_v5  ;;  %v977_v6 = vsel %vm444_vm3, %v6380_v4, 0.0 }
 0x772   :  { %978 = vadd.xlane.f32.xlu0 %v977_v6 }
 0x7fe   :  { %v982_v11 = vpop.xlane.xlu1 %981 }
 0x7ff   :  { %6381 = vrcp.f32 %v982_v11  ;;  %v979_v12 = vpop.xlane.xlu0 %978 }
 0x800   :  { %6383 = vrcp.f32 %v979_v12 }
 0x809   :  { %v6382_v13 = vpop.eup %6381 }
 0x80a   :  { %v6384_v16 = vpop.eup %6383  ;;  %v986_v18 = vmul.f32 %v6382_v13, %v6378_v3  ;;  %v6091_v3 = vpack.c.bf16 %v5003_v2, %v5002_v63 }
 0x80b   :  { %v985_v17 = vmul.f32 %v6384_v16, %v6380_v4  ;;  %v4999_v4 = vld [vmem:[%s7409_s7 + $0x10] sm:$0xff]  ;;  %v6107_v16 = vpack.c.bf16 %v5015_v15, %v5014_v14 }
 0x80d   :  { %5566 = vmatprep.mubr.msk.f32.mxu0 %vm444_vm3, %v985_v17  ;;  %v5016_v17 = vld [vmem:[%s7407_s6 + $0x70] sm:$0xff] }
 0x80e   :  { %5567 = vmatmul.mubr.msk.f32.vlgmr.msra.gmra.mrb[12].mxu0 %vm444_vm3, %v986_v18  ;;  %v5017_v18 = vld [vmem:[%s7407_s6 + $0x78] sm:$0xff] }
 0x80f   :  { %6060 = vmatpush3.bf16.msra.mxu0 %v6057_v9  ;;  %5582 = vmatprep.mubr.msk.f32.mxu0 %vm68_vm0, %v6593_v35  ;;  %v5005_v9 = vld [vmem:[%s7431_s23 + $0x78] sm:$0xff] }
 0x810   :  { %6062 = vmatprep.subr.bf16.mxu0 %v6061_v19  ;;  %v6095_v13 = vpack.c.bf16 %v5005_v9, %v5004_v8 }
 0x813   :  { %6064 = vmatpush3.bf16.msra.mxu0 %v6061_v19  ;;  %v6111_v19 = vpack.c.bf16 %v5017_v18, %v5016_v17  ;;  %v2229_v17 = vld [vmem:[%s7411_s11] sm:$0xff]  ;;  %v2230_v18 = vld [vmem:[%s7411_s11 + $0x8] sm:$0xff] }
 0x814   :  { %6074 = vmatprep.subr.bf16.mxu0 %v6073_v22 }
 0x816   :  { %5583 = vmatmul.mubr.msk.f32.vlgmr.msra.gmra.mrb[14].mxu0 %vm68_vm0, %v6603_v40 }
 0x817   :  { %6076 = vmatpush3.bf16.msra.mxu0 %v6073_v22  ;;  %5604 = vmatprep.mubr.msk.f32.mxu0 %vm68_vm0, %v6593_v35  ;;  %v6099_v22 = vpack.c.bf16 %v5009_v21, %v5008_v20  ;;  %v2231_v20 = vld [vmem:[%s7411_s11 + $0x10] sm:$0xff]  ;;  %v2232_v21 = vld [vmem:[%s7411_s11 + $0x18] sm:$0xff] }
 0x818   :  { %6078 = vmatprep.subr.bf16.mxu0 %v6077_v25 }
 0x81b   :  { %6080 = vmatpush3.bf16.msra.mxu0 %v6077_v25 }
 0x81e   :  { %5605 = vmatmul.mubr.msk.f32.vlgmr.msra.gmra.mrb[16].mxu0 %vm68_vm0, %v6603_v40 }
 0x8e1   :  { %v5568_v31 = vpop.f32.mrb[12].mxu0 }
 0x8e2   :  { %v1059_v32 = vpop.f32.mrb[13].mxu0 }
 0x8e3   :  { %5571 = vmatprep.mubr.msk.f32.mxu1 %vm356_vm1, %v1059_v32 }
 0x8e4   :  { %5572 = vmatmul.mubr.msk.f32.vlgmr.msra.gmra.mrb[2].mxu1 %vm356_vm1, %v5568_v31 }
 0x8e5   :  { %6068 = vmatpush3.bf16.msra.mxu1 %v6065_v28  ;;  %5593 = vmatprep.mubr.msk.f32.mxu1 %vm68_vm0, %v6593_v35 }
 0x8e6   :  { %6070 = vmatprep.subr.bf16.mxu1 %v6069_v33 }
 0x8e9   :  { %v5584_v34 = vpop.f32.mrb[14].mxu0  ;;  %6072 = vmatpush3.bf16.msra.mxu1 %v6069_v33 }
 0x8ea   :  { %v1224_v36 = vpop.f32.mrb[15].mxu0 }
 0x8ec   :  { %5594 = vmatmul.mubr.msk.f32.vlgmr.msra.gmra.mrb[8].mxu1 %vm68_vm0, %v6603_v40 }
 0x8ed   :  { %5611 = vmatprep.mubr.msk.f32.mxu1 %vm356_vm1, %v1224_v36 }
 0x8f1   :  { %v5606_v37 = vpop.f32.mrb[16].mxu0 }
 0x8f2   :  { %v1384_v38 = vpop.f32.mrb[17].mxu0 }
 0x8f3   :  { %v6087_v39 = vpack.c.bf16 %v5606_v37, %v1384_v38 }
 0x8f5   :  { %6088 = vmatprep.subr.bf16.mxu0 %v6087_v39 }
 0x8f6   :  { %6090 = vmatpush3.bf16.msra.mxu0 %v6087_v39 }
 0x8f7   :  { %6092 = vmatprep.subr.bf16.mxu0 %v6091_v3 }
 0x9bf   :  { %v5595_v41 = vpop.f32.mrb[8].mxu1 }
 0x9c0   :  { %v1304_v42 = vpop.f32.mrb[9].mxu1 }
 0x9c1   :  { %v6081_v43 = vpack.c.bf16 %v5595_v41, %v1304_v42 }
 0x9c3   :  { %6083 = vmatprep.subr.msk.bf16.mxu1 %vm6630_vm2, %v6081_v43 }
 0x9c4   :  { %6086 = vmatpush3.bf16.xpose.msk.msra.mxu1 %vm6630_vm2, %v6081_v43 }
 0x9c5   :  { %5621 = vmatprep.subr.mxu1 %v4999_v4 }
 0x9cb   :  { %5612 = vmatmul.mubr.msk.f32.vlgmr.msra.gmra.mrb[10].mxu1 %vm356_vm1, %v5584_v34 }
 0x9cc   :  { %5622 = vmatpush3.msra.mxu1 %v4999_v4 }
 0x9cd   :  { %6100 = vmatprep.subr.bf16.mxu1 %v6099_v22 }
 0xa9e   :  { %v5613_v44 = vpop.f32.mrb[10].mxu1 }
 0xa9f   :  { %v1477_v45 = vadd.f32 %v5613_v44, %v6642_v57  ;;  %v1471_v46 = vpop.f32.mrb[11].mxu1 }
 0xaa0   :  { %v1472_v47 = vadd.f32 %v1471_v46, %v6647_v58 }
 0xaa1   :  { %v1483_v48 = vsel %vm444_vm3, %v1477_v45, -inf }
 0xaa2   :  { %1484 = vmax.xlane.f32.xlu1 %v1483_v48  ;;  %v1480_v49 = vsel %vm444_vm3, %v1472_v47, -inf }
 0xaa3   :  { %1481 = vmax.xlane.f32.xlu0 %v1480_v49 }
 0xb2f   :  { %v1485_v50 = vpop.xlane.xlu1 %1484 }
 0xb30   :  { %v1487_v51 = vsub.f32 %v1477_v45, %v1485_v50  ;;  %v1482_v53 = vpop.xlane.xlu0 %1481  ;;  %v5026_v50 = vld [vmem:[%s7409_s7 + $0x18] sm:$0xff] }
 0xb31   :  { %v1486_v54 = vsub.f32 %v1472_v47, %v1482_v53 }
 0xb32   :  { %v1490_v55 = vmul.f32 1.442695, %v1487_v51 }
 0xb33   :  { %v1488_v56 = vmul.f32 1.442695, %v1486_v54 }
 0xb34   :  { %6385 = vpow2.f32 %v1490_v55 }
 0xb35   :  { %6387 = vpow2.f32 %v1488_v56 }
 0xb3e   :  { %v6386_v59 = vpop.eup %6385 }
 0xb3f   :  { %v6388_v60 = vpop.eup %6387  ;;  %v1495_v61 = vsel %vm444_vm3, %v6386_v59, 0.0 }
 0xb40   :  { %1496 = vadd.xlane.f32.xlu1 %v1495_v61  ;;  %v1492_v62 = vsel %vm444_vm3, %v6388_v60, 0.0 }
 0xb41   :  { %1493 = vadd.xlane.f32.xlu0 %v1492_v62  ;;  %v4947_v62 = vld [vmem:[%s7410_s8] ss:$0 sm:$0xff] }
 0xbcd   :  { %v1497_v5 = vpop.xlane.xlu1 %1496 }
 0xbce   :  { %6389 = vrcp.f32 %v1497_v5  ;;  %v1494_v6 = vpop.xlane.xlu0 %1493 }
 0xbcf   :  { %6391 = vrcp.f32 %v1494_v6 }
 0xbd8   :  { %v6390_v7 = vpop.eup %6389 }
 0xbd9   :  { %v6392_v10 = vpop.eup %6391  ;;  %v1501_v12 = vmul.f32 %v6390_v7, %v6386_v59 }
 0xbda   :  { %v1500_v11 = vmul.f32 %v6392_v10, %v6388_v60 }
 0xbdc   :  { %5618 = vmatprep.mubr.msk.f32.mxu0 %vm444_vm3, %v1500_v11 }
 0xbdd   :  { %5619 = vmatmul.mubr.msk.f32.vlgmr.msra.gmra.mrb[18].mxu0 %vm444_vm3, %v1501_v12 }
 0xbde   :  { %6094 = vmatpush3.bf16.msra.mxu0 %v6091_v3  ;;  %5634 = vmatprep.mubr.msk.f32.mxu0 %vm68_vm0, %v6593_v35 }
 0xbdf   :  { %6096 = vmatprep.subr.bf16.mxu0 %v6095_v13 }
 0xbe2   :  { %6098 = vmatpush3.bf16.msra.mxu0 %v6095_v13 }
 0xbe3   :  { %6108 = vmatprep.subr.bf16.mxu0 %v6107_v16 }
 0xbe5   :  { %5635 = vmatmul.mubr.msk.f32.vlgmr.msra.gmra.mrb[20].mxu0 %vm68_vm0, %v6603_v40 }
 0xbe6   :  { %6110 = vmatpush3.bf16.msra.mxu0 %v6107_v16  ;;  %5656 = vmatprep.mubr.msk.f32.mxu0 %vm68_vm0, %v6593_v35 }
 0xbe7   :  { %6112 = vmatprep.subr.bf16.mxu0 %v6111_v19 }
 0xbea   :  { %6114 = vmatpush3.bf16.msra.mxu0 %v6111_v19  ;;  %v6125_v19 = vpack.c.bf16 %v2230_v18, %v2229_v17 }
 0xbed   :  { %5657 = vmatmul.mubr.msk.f32.vlgmr.msra.gmra.mrb[22].mxu0 %vm68_vm0, %v6603_v40 }
 0xcb0   :  { %v5620_v25 = vpop.f32.mrb[18].mxu0 }
 0xcb1   :  { %v1574_v26 = vpop.f32.mrb[19].mxu0 }
 0xcb2   :  { %5623 = vmatprep.mubr.msk.f32.mxu1 %vm356_vm1, %v1574_v26  ;;  %v6133_v26 = vpack.c.bf16 %v2324_v24, %v2323_v23 }
 0xcb3   :  { %5624 = vmatmul.mubr.msk.f32.vlgmr.msra.gmra.mrb[2].mxu1 %vm356_vm1, %v5620_v25  ;;  %v2325_v25 = vld [vmem:[%s7412_s13 + $0x10] sm:$0xff] }
 0xcb4   :  { %6102 = vmatpush3.bf16.msra.mxu1 %v6099_v22  ;;  %5645 = vmatprep.mubr.msk.f32.mxu1 %vm68_vm0, %v6593_v35  ;;  %v6129_v22 = vpack.c.bf16 %v2232_v21, %v2231_v20 }
 0xcb5   :  { %6104 = vmatprep.subr.bf16.mxu1 %v6103_v27 }
 0xcb8   :  { %v5636_v28 = vpop.f32.mrb[20].mxu0  ;;  %6106 = vmatpush3.bf16.msra.mxu1 %v6103_v27  ;;  %v2326_v27 = vld [vmem:[%s7412_s13 + $0x18] sm:$0xff] }
 0xcb9   :  { %v1739_v29 = vpop.f32.mrb[21].mxu0 }
 0xcbb   :  { %5646 = vmatmul.mubr.msk.f32.vlgmr.msra.gmra.mrb[12].mxu1 %vm68_vm0, %v6603_v40 }
 0xcbc   :  { %5663 = vmatprep.mubr.msk.f32.mxu1 %vm356_vm1, %v1739_v29  ;;  %v2327_v29 = vld [vmem:[%s7412_s13 + $0x20] sm:$0xff] }
 0xcc0   :  { %v5658_v30 = vpop.f32.mrb[22].mxu0 }
 0xcc1   :  { %v1899_v31 = vpop.f32.mrb[23].mxu0 }
 0xcc2   :  { %v6121_v32 = vpack.c.bf16 %v5658_v30, %v1899_v31  ;;  %v2328_v30 = vld [vmem:[%s7412_s13 + $0x28] sm:$0xff] }
 0xcc3   :  { %v6141_v31 = vpack.c.bf16 %v2328_v30, %v2327_v29  ;;  %v5042_v29 = vld [vmem:[%s7431_s23 + $0x90] sm:$0xff]  ;;  %v5043_v30 = vld [vmem:[%s7431_s23 + $0x98] sm:$0xff] }
 0xcc4   :  { %6122 = vmatprep.subr.bf16.mxu0 %v6121_v32 }
 0xcc5   :  { %6124 = vmatpush3.bf16.msra.mxu0 %v6121_v32  ;;  %v2329_v32 = vld [vmem:[%s7412_s13 + $0x30] sm:$0xff] }
 0xcc6   :  { %6126 = vmatprep.subr.bf16.mxu0 %v6125_v19 }
 0xd8e   :  { %v5647_v33 = vpop.f32.mrb[12].mxu1 }
 0xd8f   :  { %v1819_v34 = vpop.f32.mrb[13].mxu1 }
 0xd90   :  { %v6115_v36 = vpack.c.bf16 %v5647_v33, %v1819_v34  ;;  %v2330_v33 = vld [vmem:[%s7412_s13 + $0x38] sm:$0xff] }
 0xd91   :  { %v6145_v34 = vpack.c.bf16 %v2330_v33, %v2329_v32  ;;  %v5046_v32 = vld [vmem:[%s7432_s30 + $0x80] sm:$0xff]  ;;  %v5047_v33 = vld [vmem:[%s7432_s30 + $0x88] sm:$0xff] }
 0xd92   :  { %6117 = vmatprep.subr.msk.bf16.mxu1 %vm6630_vm2, %v6115_v36 }
 0xd93   :  { %6120 = vmatpush3.bf16.xpose.msk.msra.mxu1 %vm6630_vm2, %v6115_v36  ;;  %v2331_v36 = vld [vmem:[%s7412_s13 + $0x40] sm:$0xff] }
 0xd94   :  { %5673 = vmatprep.subr.mxu1 %v5026_v50 }
 0xd9a   :  { %5664 = vmatmul.mubr.msk.f32.vlgmr.msra.gmra.mrb[14].mxu1 %vm356_vm1, %v5636_v28  ;;  %v6137_v28 = vpack.c.bf16 %v2326_v27, %v2325_v25  ;;  %v5041_v27 = vld [vmem:[%s7431_s23 + $0x88] sm:$0xff] }
 0xd9b   :  { %5674 = vmatpush3.msra.mxu1 %v5026_v50 }
 0xd9c   :  { %6134 = vmatprep.subr.bf16.mxu1 %v6133_v26 }
 0xe6d   :  { %v5665_v35 = vpop.f32.mrb[14].mxu1 }
 0xe6e   :  { %v1992_v40 = vadd.f32 %v5665_v35, %v6642_v57  ;;  %v1986_v37 = vpop.f32.mrb[15].mxu1  ;;  %v2332_v35 = vld [vmem:[%s7412_s13 + $0x48] sm:$0xff] }
 0xe6f   :  { %v1987_v38 = vadd.f32 %v1986_v37, %v6647_v58  ;;  %v2333_v37 = vld [vmem:[%s7412_s13 + $0x50] sm:$0xff] }
 0xe70   :  { %v1998_v39 = vsel %vm444_vm3, %v1992_v40, -inf }
 0xe71   :  { %1999 = vmax.xlane.f32.xlu1 %v1998_v39  ;;  %v1995_v41 = vsel %vm444_vm3, %v1987_v38, -inf }
 0xe72   :  { %1996 = vmax.xlane.f32.xlu0 %v1995_v41  ;;  %v2335_v41 = vld [vmem:[%s7412_s13 + $0x60] sm:$0xff] }
 0xefe   :  { %v2000_v42 = vpop.xlane.xlu1 %1999 }
 0xeff   :  { %v2002_v43 = vsub.f32 %v1992_v40, %v2000_v42  ;;  %v1997_v44 = vpop.xlane.xlu0 %1996  ;;  %v6149_v40 = vpack.c.bf16 %v2332_v35, %v2331_v36  ;;  %v2336_v42 = vld [vmem:[%s7412_s13 + $0x68] sm:$0xff] }
 0xf00   :  { %v2001_v45 = vsub.f32 %v1987_v38, %v1997_v44  ;;  %v2334_v38 = vld [vmem:[%s7412_s13 + $0x58] sm:$0xff] }
 0xf01   :  { %v2005_v46 = vmul.f32 1.442695, %v2002_v43  ;;  %v6153_v39 = vpack.c.bf16 %v2334_v38, %v2333_v37  ;;  %v6157_v43 = vpack.c.bf16 %v2336_v42, %v2335_v41  ;;  %v5037_v42 = vld [vmem:[%s7433_s5 + $0x1] ss:$0 sm:$0xff] }
 0xf02   :  { %v2003_v47 = vmul.f32 1.442695, %v2001_v45 }
 0xf03   :  { %6393 = vpow2.f32 %v2005_v46 }
 0xf04   :  { %6395 = vpow2.f32 %v2003_v47 }
 0xf0d   :  { %v6394_v48 = vpop.eup %6393 }
 0xf0e   :  { %v6396_v49 = vpop.eup %6395  ;;  %v2010_v57 = vsel %vm444_vm3, %v6394_v48, 0.0 }
 0xf0f   :  { %2011 = vadd.xlane.f32.xlu1 %v2010_v57  ;;  %v2007_v58 = vsel %vm444_vm3, %v6396_v49, 0.0 }
 0xf10   :  { %2008 = vadd.xlane.f32.xlu0 %v2007_v58  ;;  %v5029_v58 = vld [vmem:[%s7413_s9] ss:$0 sm:$0xff] }
 0xf9c   :  { %v2012_v51 = vpop.xlane.xlu1 %2011 }
 0xf9d   :  { %6397 = vrcp.f32 %v2012_v51  ;;  %v2009_v53 = vpop.xlane.xlu0 %2008 }
 0xf9e   :  { %6399 = vrcp.f32 %v2009_v53 }
 0xfa7   :  { %v6398_v54 = vpop.eup %6397 }
 0xfa8   :  { %v6400_v55 = vpop.eup %6399  ;;  %v2016_v59 = vmul.f32 %v6398_v54, %v6394_v48  ;;  %v5030_v54 = vld [vmem:[%s7414_s10] ss:$0 sm:$0xff] }
 0xfa9   :  { %v2015_v56 = vmul.f32 %v6400_v55, %v6396_v49 }
 0xfab   :  { %5670 = vmatprep.mubr.msk.f32.mxu0 %vm444_vm3, %v2015_v56 }
 0xfac   :  { %5671 = vmatmul.mubr.msk.f32.vlgmr.msra.gmra.mrb[24].mxu0 %vm444_vm3, %v2016_v59 }
 0xfad   :  { %6128 = vmatpush3.bf16.msra.mxu0 %v6125_v19 }
 0xfae   :  { %6130 = vmatprep.subr.bf16.mxu0 %v6129_v22 }
 0xfb1   :  { %6132 = vmatpush3.bf16.msra.mxu0 %v6129_v22 }
0x107f   :  { %v5672_v60 = vpop.f32.mrb[24].mxu0 }
0x1080   :  { %v2089_v61 = vpop.f32.mrb[25].mxu0 }
0x1081   :  { %5675 = vmatprep.mubr.msk.f32.mxu1 %vm356_vm1, %v2089_v61  ;;  %v2337_v61 = vld [vmem:[%s7412_s13 + $0x70] sm:$0xff] }
0x1082   :  { %5676 = vmatmul.mubr.msk.f32.vlgmr.msra.gmra.mrb[2].mxu1 %vm356_vm1, %v5672_v60 }
0x1083   :  { %6136 = vmatpush3.bf16.msra.mxu1 %v6133_v26  ;;  %v5040_v26 = vld [vmem:[%s7431_s23 + $0x80] sm:$0xff] }
0x1084   :  { %6138 = vmatprep.subr.bf16.mxu1 %v6137_v28 }
0x1087   :  { %6140 = vmatpush3.bf16.msra.mxu1 %v6137_v28  ;;  %v6165_v28 = vpack.c.bf16 %v5041_v27, %v5040_v26 }
0x1088   :  { %6142 = vmatprep.subr.bf16.mxu1 %v6141_v31 }
0x1089   :  { %6166 = vmatprep.subr.bf16.mxu0 %v6165_v28 }
0x108b   :  { %6144 = vmatpush3.bf16.msra.mxu1 %v6141_v31  ;;  %v6169_v31 = vpack.c.bf16 %v5043_v30, %v5042_v29 }
0x108c   :  { %6146 = vmatprep.subr.bf16.mxu1 %v6145_v34 }
0x108f   :  { %6148 = vmatpush3.bf16.msra.mxu1 %v6145_v34  ;;  %v6173_v34 = vpack.c.bf16 %v5047_v33, %v5046_v32 }
0x1090   :  { %6150 = vmatprep.subr.bf16.mxu1 %v6149_v40 }
0x1093   :  { %6152 = vmatpush3.bf16.msra.mxu1 %v6149_v40 }
0x1094   :  { %6154 = vmatprep.subr.bf16.mxu1 %v6153_v39 }
0x1097   :  { %6156 = vmatpush3.bf16.msra.mxu1 %v6153_v39 }
0x1098   :  { %6158 = vmatprep.subr.bf16.mxu1 %v6157_v43 }
0x109b   :  { %6160 = vmatpush3.bf16.msra.mxu1 %v6157_v43 }
0x1155   :  { %v5677_v63 = vpop.f32.mrb[2].mxu1 }
0x1156   :  { %v6349_v2 = vadd.f32 %v5677_v63, %v4947_v62  ;;  %v2172_v3 = vpop.f32.mrb[3].mxu1 }
0x1157   :  { %v6350_v4 = vadd.f32 %v4947_v62, %v2172_v3  ;;  %v2338_v62 = vld [vmem:[%s7412_s13 + $0x78] sm:$0xff] }
0x1158   :  { %v6867_v5 = vadd.f32 %v6349_v2, %v6559_v1  ;;  %v6161_v63 = vpack.c.bf16 %v2338_v62, %v2337_v61  ;;  %v5031_v2 = vld [vmem:[%s7415_s12] ss:$0 sm:$0xff] }
0x1159   :  { %v6870_v6 = vadd.f32 %v6350_v4, %v6554_v0 }
0x115a   :  { %v2190_v7 = vsel %vm68_vm0, %v6867_v5, 0.0  ;;  %6162 = vmatprep.subr.bf16.mxu1 %v6161_v63 }
0x115b   :  { %2191 = vadd.xlane.f32.xlu1 %v2190_v7  ;;  %v2187_v8 = vsel %vm68_vm0, %v6870_v6, 0.0  ;;  %6164 = vmatpush3.bf16.msra.mxu1 %v6161_v63  ;;  %v5068_v63 = vld [vmem:[%s7431_s23 + $0xa0] sm:$0xff] }
0x115c   :  { %2188 = vadd.xlane.f32.xlu0 %v2187_v8 }
0x11e8   :  { %v2192_v9 = vpop.xlane.xlu1 %2191 }
0x11e9   :  { %v2194_v10 = vmul.f32 0.03125, %v2192_v9  ;;  %v2189_v11 = vpop.xlane.xlu0 %2188 }
0x11ea   :  { %v2193_v12 = vmul.f32 0.03125, %v2189_v11  ;;  %v5034_v11 = vld [vmem:[%s7416_s14] ss:$0 sm:$0xff] }
0x11eb   :  { %v6877_v13 = vsub.f32 %v6867_v5, %v2194_v10 }
0x11ec   :  { %v6880_v1 = vsub.f32 %v6870_v6, %v2193_v12 }
0x11ed   :  { %v2198_v0 = vmul.f32 %v6877_v13, %v6877_v13 }
0x11ee   :  { %v2197_v14 = vmul.f32 %v6880_v1, %v6880_v1 }
0x11ef   :  { %v2202_v15 = vsel %vm68_vm0, %v2198_v0, 0.0 }
0x11f0   :  { %2203 = vadd.xlane.f32.xlu1 %v2202_v15  ;;  %v2199_v16 = vsel %vm68_vm0, %v2197_v14, 0.0 }
0x11f1   :  { %2200 = vadd.xlane.f32.xlu0 %v2199_v16 }
0x127d   :  { %v2204_v44 = vpop.xlane.xlu1 %2203 }
0x127e   :  { %v2206_v45 = vmul.f32 0.03125, %v2204_v44  ;;  %v2201_v46 = vpop.xlane.xlu0 %2200 }
0x127f   :  { %v2205_v47 = vmul.f32 0.03125, %v2201_v46  ;;  %v5038_v46 = vld [vmem:[%s7406_s3 + $0x1] ss:$0 sm:$0xff] }
0x1280   :  { %v2208_v48 = vadd.f32 1e-05, %v2206_v45 }
0x1281   :  { %v2207_v49 = vadd.f32 1e-05, %v2205_v47 }
0x1282   :  { %6401 = vrsqrt.f32 %v2208_v48 }
0x1283   :  { %6403 = vrsqrt.f32 %v2207_v49  ;;  %v5048_v49 = vld [vmem:[%s7432_s30 + $0x90] sm:$0xff] }
0x128c   :  { %v6402_v57 = vpop.eup %6401 }
0x128d   :  { %v6404_v50 = vpop.eup %6403  ;;  %v2212_v51 = vmul.f32 %v6402_v57, %v6877_v13  ;;  %v5049_v57 = vld [vmem:[%s7432_s30 + $0x98] sm:$0xff] }
0x128e   :  { %v2211_v53 = vmul.f32 %v6404_v50, %v6880_v1 }
0x128f   :  { %v2220_v55 = vmul.f32 %v5029_v58, %v2212_v51  ;;  %v6177_v51 = vpack.c.bf16 %v5049_v57, %v5048_v49  ;;  %v5074_v49 = vld [vmem:[%s7432_s30 + $0xa0] sm:$0xff]  ;;  %v5075_v57 = vld [vmem:[%s7432_s30 + $0xa8] sm:$0xff] }
0x1290   :  { %v2219_v56 = vmul.f32 %v5029_v58, %v2211_v53  ;;  %v5052_v53 = vld [vmem:[%s7407_s6 + $0x80] sm:$0xff] }
0x1291   :  { %v2228_v60 = vadd.f32 %v5030_v54, %v2220_v55 }
0x1292   :  { %v2227_v59 = vadd.f32 %v5030_v54, %v2219_v56  ;;  %v5053_v54 = vld [vmem:[%s7407_s6 + $0x88] sm:$0xff]  ;;  %v5054_v56 = vld [vmem:[%s7407_s6 + $0x90] sm:$0xff] }
0x1293   :  { %v6181_v55 = vpack.c.bf16 %v5053_v54, %v5052_v53  ;;  %v5076_v53 = vld [vmem:[%s7432_s30 + $0xb0] sm:$0xff]  ;;  %v5077_v54 = vld [vmem:[%s7432_s30 + $0xb8] sm:$0xff] }
0x1294   :  { %5686 = vmatprep.mubr.msk.f32.mxu0 %vm68_vm0, %v2227_v59  ;;  %v5055_v59 = vld [vmem:[%s7407_s6 + $0x98] sm:$0xff] }
0x1295   :  { %5687 = vmatmul.mubr.msk.f32.vlgmr.msra.gmra.mrb[26].mxu0 %vm68_vm0, %v2228_v60  ;;  %v6185_v60 = vpack.c.bf16 %v5055_v59, %v5054_v56  ;;  %v6211_v59 = vpack.c.bf16 %v5077_v54, %v5076_v53 }
0x1296   :  { %6168 = vmatpush3.bf16.msra.mxu0 %v6165_v28 }
0x1297   :  { %6170 = vmatprep.subr.bf16.mxu0 %v6169_v31 }
0x129a   :  { %6172 = vmatpush3.bf16.msra.mxu0 %v6169_v31 }
0x129b   :  { %6174 = vmatprep.subr.bf16.mxu0 %v6173_v34 }
0x1368   :  { %v5688_v3 = vpop.f32.mrb[26].mxu0 }
0x1369   :  { %v2318_v4 = vadd.f32 %v5688_v3, %v5031_v2  ;;  %v2312_v7 = vpop.f32.mrb[27].mxu0 }
0x136a   :  { %v2313_v8 = vadd.f32 %v5031_v2, %v2312_v7  ;;  %v5069_v2 = vld [vmem:[%s7431_s23 + $0xa8] sm:$0xff] }
0x136b   :  { %v2322_v10 = vmax.f32 %v2318_v4, 0.0 }
0x136c   :  { %v2321_v9 = vmax.f32 %v2313_v8, 0.0  ;;  %v6199_v8 = vpack.c.bf16 %v5069_v2, %v5068_v63 }
0x136e   :  { %5721 = vmatprep.mubr.f32.mxu1 %v2321_v9  ;;  %v5070_v9 = vld [vmem:[%s7431_s23 + $0xb0] sm:$0xff] }
0x136f   :  { %5722 = vmatmul.mubr.f32.vlgmr.msra.gmra.mrb[16].mxu1 %v2322_v10  ;;  %v5071_v10 = vld [vmem:[%s7431_s23 + $0xb8] sm:$0xff] }
0x1442   :  { %v5723_v12 = vpop.f32.mrb[16].mxu1 }
0x1443   :  { %v2418_v13 = vadd.f32 %v5723_v12, %v5034_v11  ;;  %v2412_v1 = vpop.f32.mrb[17].mxu1 }
0x1444   :  { %v2413_v0 = vadd.f32 %v5034_v11, %v2412_v1  ;;  %v6203_v1 = vpack.c.bf16 %v5071_v10, %v5070_v9 }
0x1445   :  { %v6965_v14 = vadd.f32 %v2418_v13, %v6867_v5 }
0x1446   :  { %v6968_v15 = vadd.f32 %v2413_v0, %v6870_v6  ;;  %v5080_v0 = vld [vmem:[%s7407_s6 + $0xa0] sm:$0xff] }
0x1447   :  { %v2430_v16 = vsel %vm68_vm0, %v6965_v14, 0.0 }
0x1448   :  { %2431 = vadd.xlane.f32.xlu1 %v2430_v16  ;;  %v2427_v17 = vsel %vm68_vm0, %v6968_v15, 0.0  ;;  %v5081_v16 = vld [vmem:[%s7407_s6 + $0xa8] sm:$0xff] }
0x1449   :  { %2428 = vadd.xlane.f32.xlu0 %v2427_v17  ;;  %v6215_v17 = vpack.c.bf16 %v5081_v16, %v5080_v0 }
0x14d5   :  { %v2432_v18 = vpop.xlane.xlu1 %2431 }
0x14d6   :  { %v2434_v19 = vmul.f32 0.03125, %v2432_v18  ;;  %v2429_v20 = vpop.xlane.xlu0 %2428  ;;  %v5082_v18 = vld [vmem:[%s7407_s6 + $0xb0] sm:$0xff] }
0x14d7   :  { %v2433_v21 = vmul.f32 0.03125, %v2429_v20 }
0x14d8   :  { %v2436_v22 = vsub.f32 %v6965_v14, %v2434_v19  ;;  %v5083_v19 = vld [vmem:[%s7407_s6 + $0xb8] sm:$0xff] }
0x14d9   :  { %v2435_v5 = vsub.f32 %v6968_v15, %v2433_v21  ;;  %v6219_v20 = vpack.c.bf16 %v5083_v19, %v5082_v18  ;;  %v5095_v19 = vld [vmem:[%s7431_s23 + $0xc0] sm:$0xff] }
0x14da   :  { %v2438_v23 = vmul.f32 %v2436_v22, %v2436_v22 }
0x14db   :  { %v2437_v24 = vmul.f32 %v2435_v5, %v2435_v5 }
0x14dc   :  { %v2442_v6 = vsel %vm68_vm0, %v2438_v23, 0.0 }
0x14dd   :  { %2443 = vadd.xlane.f32.xlu1 %v2442_v6  ;;  %v2439_v25 = vsel %vm68_vm0, %v2437_v24, 0.0  ;;  %v7083_v24 = vld [vmem:[%s7408_s1] sm:$0xff] }
0x14de   :  { %2440 = vadd.xlane.f32.xlu0 %v2439_v25 }
0x156a   :  { %v2444_v36 = vpop.xlane.xlu1 %2443 }
0x156b   :  { %v2446_v35 = vmul.f32 0.03125, %v2444_v36  ;;  %v2441_v40 = vpop.xlane.xlu0 %2440 }
0x156c   :  { %v2445_v37 = vmul.f32 0.03125, %v2441_v40 }
0x156d   :  { %v2448_v38 = vadd.f32 1e-05, %v2446_v35 }
0x156e   :  { %v2447_v39 = vadd.f32 1e-05, %v2445_v37 }
0x156f   :  { %6405 = vrsqrt.f32 %v2448_v38 }
0x1570   :  { %6407 = vrsqrt.f32 %v2447_v39 }
0x1579   :  { %v6406_v41 = vpop.eup %6405 }
0x157a   :  { %v6408_v43 = vpop.eup %6407  ;;  %v2452_v44 = vmul.f32 %v6406_v41, %v2436_v22  ;;  %v7077_v22 = vld [vmem:[%s7408_s1 + $0x8] sm:$0xff] }
0x157b   :  { %v2451_v45 = vmul.f32 %v6408_v43, %v2435_v5 }
0x157c   :  { %v2460_v47 = vmul.f32 %v5037_v42, %v2452_v44 }
0x157d   :  { %v2459_v48 = vmul.f32 %v5037_v42, %v2451_v45  ;;  %v5064_v42 = vld [vmem:[%s7409_s7 + $0x20] sm:$0xff] }
0x157e   :  { %v7010_v50 = vadd.f32 %v5038_v46, %v2460_v47 }
0x157f   :  { %v7008_v58 = vadd.f32 %v5038_v46, %v2459_v48 }
0x1581   :  { %5732 = vmatprep.mubr.msk.f32.mxu0 %vm68_vm0, %v7008_v58 }
0x1582   :  { %5733 = vmatmul.mubr.msk.f32.vlgmr.msra.gmra.mrb[28].mxu0 %vm68_vm0, %v7010_v50 }
0x1583   :  { %6176 = vmatpush3.bf16.msra.mxu0 %v6173_v34  ;;  %5743 = vmatprep.mubr.msk.f32.mxu0 %vm68_vm0, %v7008_v58 }
0x1584   :  { %6178 = vmatprep.subr.bf16.mxu0 %v6177_v51 }
0x1587   :  { %6180 = vmatpush3.bf16.msra.mxu0 %v6177_v51  ;;  %v6207_v51 = vpack.c.bf16 %v5075_v57, %v5074_v49 }
0x1588   :  { %6182 = vmatprep.subr.bf16.mxu0 %v6181_v55 }
0x158a   :  { %5744 = vmatmul.mubr.msk.f32.vlgmr.msra.gmra.mrb[30].mxu0 %vm68_vm0, %v7010_v50 }
0x158b   :  { %6184 = vmatpush3.bf16.msra.mxu0 %v6181_v55  ;;  %5754 = vmatprep.mubr.msk.f32.mxu0 %vm68_vm0, %v7008_v58 }
0x158c   :  { %6186 = vmatprep.subr.bf16.mxu0 %v6185_v60 }
0x158f   :  { %6188 = vmatpush3.bf16.msra.mxu0 %v6185_v60 }
0x1592   :  { %5755 = vmatmul.mubr.msk.f32.vlgmr.msra.gmra.mrb[32].mxu0 %vm68_vm0, %v7010_v50 }
0x1655   :  { %v5734_v61 = vpop.f32.mrb[28].mxu0 }
0x1656   :  { %v2548_v62 = vpop.f32.mrb[29].mxu0 }
0x1657   :  { %5761 = vmatprep.mubr.msk.f32.mxu0 %vm356_vm1, %v2548_v62 }
0x165d   :  { %v5745_v3 = vpop.f32.mrb[30].mxu0 }
0x165e   :  { %v2628_v4 = vpop.f32.mrb[31].mxu0 }
0x165f   :  { %v6189_v7 = vpack.c.bf16 %v5745_v3, %v2628_v4 }
0x1661   :  { %6191 = vmatprep.subr.msk.bf16.mxu0 %vm6630_vm2, %v6189_v7 }
0x1662   :  { %6194 = vmatpush3.bf16.xpose.msk.msra.mxu0 %vm6630_vm2, %v6189_v7 }
0x1663   :  { %6200 = vmatprep.subr.bf16.mxu0 %v6199_v8 }
0x1665   :  { %v5756_v11 = vpop.f32.mrb[32].mxu0 }
0x1666   :  { %v2708_v12 = vpop.f32.mrb[33].mxu0 }
0x1667   :  { %v6195_v13 = vpack.c.bf16 %v5756_v11, %v2708_v12 }
0x1669   :  { %5762 = vmatmul.mubr.msk.f32.vlgmr.msra.gmra.mrb[34].mxu0 %vm356_vm1, %v5734_v61  ;;  %6196 = vmatprep.subr.bf16.mxu1 %v6195_v13 }
0x166a   :  { %6198 = vmatpush3.bf16.msra.mxu1 %v6195_v13  ;;  %6202 = vmatpush3.bf16.msra.mxu0 %v6199_v8 }
0x166b   :  { %5784 = vmatprep.mubr.msk.f32.mxu0 %vm68_vm0, %v7008_v58  ;;  %6204 = vmatprep.subr.bf16.mxu0 %v6203_v1 }
0x166c   :  { %5771 = vmatprep.subr.mxu1 %v5064_v42 }
0x166e   :  { %6206 = vmatpush3.bf16.msra.mxu0 %v6203_v1 }
0x166f   :  { %6216 = vmatprep.subr.bf16.mxu0 %v6215_v17 }
0x1671   :  { %5785 = vmatmul.mubr.msk.f32.vlgmr.msra.gmra.mrb[36].mxu0 %vm68_vm0, %v7010_v50 }
0x1672   :  { %6218 = vmatpush3.bf16.msra.mxu0 %v6215_v17  ;;  %5806 = vmatprep.mubr.msk.f32.mxu0 %vm68_vm0, %v7008_v58 }
0x1673   :  { %6220 = vmatprep.subr.bf16.mxu0 %v6219_v20 }
0x1676   :  { %6222 = vmatpush3.bf16.msra.mxu0 %v6219_v20  ;;  %v5096_v20 = vld [vmem:[%s7431_s23 + $0xc8] sm:$0xff] }
0x1679   :  { %5807 = vmatmul.mubr.msk.f32.vlgmr.msra.gmra.mrb[38].mxu0 %vm68_vm0, %v7010_v50 }
0x173c   :  { %v5763_v21 = vpop.f32.mrb[34].mxu0 }
0x173d   :  { %v2801_v5 = vadd.f32 %v7077_v22, %v5763_v21  ;;  %v2795_v23 = vpop.f32.mrb[35].mxu0  ;;  %v6233_v21 = vpack.c.bf16 %v5096_v20, %v5095_v19  ;;  %v5124_v20 = vld [vmem:[%s7431_s23 + $0xf0] sm:$0xff] }
0x173e   :  { %v2796_v6 = vadd.f32 %v7083_v24, %v2795_v23 }
0x173f   :  { %v2807_v25 = vsel %vm444_vm3, %v2801_v5, -inf }
0x1740   :  { %2808 = vmax.xlane.f32.xlu1 %v2807_v25  ;;  %v2804_v26 = vsel %vm444_vm3, %v2796_v6, -inf }
0x1741   :  { %2805 = vmax.xlane.f32.xlu0 %v2804_v26  ;;  %v5097_v26 = vld [vmem:[%s7431_s23 + $0xd0] sm:$0xff] }
0x1744   :  { %v5786_v27 = vpop.f32.mrb[36].mxu0 }
0x1745   :  { %v3069_v28 = vpop.f32.mrb[37].mxu0 }
0x174c   :  { %v5808_v29 = vpop.f32.mrb[38].mxu0 }
0x174d   :  { %v3229_v30 = vpop.f32.mrb[39].mxu0 }
0x174e   :  { %v6229_v31 = vpack.c.bf16 %v5808_v29, %v3229_v30 }
0x1750   :  { %6230 = vmatprep.subr.bf16.mxu0 %v6229_v31 }
0x1751   :  { %6232 = vmatpush3.bf16.msra.mxu0 %v6229_v31 }
0x1752   :  { %6234 = vmatprep.subr.bf16.mxu0 %v6233_v21 }
0x17cd   :  { %v2809_v32 = vpop.xlane.xlu1 %2808 }
0x17ce   :  { %v2811_v33 = vsub.f32 %v2801_v5, %v2809_v32  ;;  %v2806_v34 = vpop.xlane.xlu0 %2805  ;;  %v5092_v5 = vld [vmem:[%s7409_s7 + $0x28] sm:$0xff]  ;;  %v5107_v32 = vld [vmem:[%s7407_s6 + $0xc0] sm:$0xff] }
0x17cf   :  { %v2810_v36 = vsub.f32 %v2796_v6, %v2806_v34 }
0x17d0   :  { %v2814_v35 = vmul.f32 1.442695, %v2811_v33  ;;  %v5108_v33 = vld [vmem:[%s7407_s6 + $0xc8] sm:$0xff] }
0x17d1   :  { %v2812_v40 = vmul.f32 1.442695, %v2810_v36  ;;  %v6249_v34 = vpack.c.bf16 %v5108_v33, %v5107_v32  ;;  %v5109_v36 = vld [vmem:[%s7407_s6 + $0xd0] sm:$0xff]  ;;  %v5128_v32 = vld [vmem:[%s7432_s30 + $0xe0] sm:$0xff]  ;;  %v5129_v33 = vld [vmem:[%s7432_s30 + $0xe8] sm:$0xff] }
0x17d2   :  { %6409 = vpow2.f32 %v2814_v35  ;;  %v5110_v35 = vld [vmem:[%s7407_s6 + $0xd8] sm:$0xff] }
0x17d3   :  { %6411 = vpow2.f32 %v2812_v40  ;;  %v6253_v40 = vpack.c.bf16 %v5110_v35, %v5109_v36  ;;  %v5130_v36 = vld [vmem:[%s7432_s30 + $0xf0] sm:$0xff]  ;;  %v5131_v35 = vld [vmem:[%s7432_s30 + $0xf8] sm:$0xff] }
0x17dc   :  { %v6410_v37 = vpop.eup %6409 }
0x17dd   :  { %v6412_v38 = vpop.eup %6411  ;;  %v2819_v39 = vsel %vm444_vm3, %v6410_v37, 0.0 }
0x17de   :  { %2820 = vadd.xlane.f32.xlu1 %v2819_v39  ;;  %v2816_v41 = vsel %vm444_vm3, %v6412_v38, 0.0 }
0x17df   :  { %2817 = vadd.xlane.f32.xlu0 %v2816_v41  ;;  %v5103_v41 = vld [vmem:[%s7432_s30 + $0xd0] sm:$0xff] }
0x186b   :  { %v2821_v43 = vpop.xlane.xlu1 %2820 }
0x186c   :  { %6413 = vrcp.f32 %v2821_v43  ;;  %v2818_v44 = vpop.xlane.xlu0 %2817 }
0x186d   :  { %6415 = vrcp.f32 %v2818_v44 }
0x1876   :  { %v6414_v45 = vpop.eup %6413 }
0x1877   :  { %v6416_v46 = vpop.eup %6415  ;;  %v2825_v48 = vmul.f32 %v6414_v45, %v6410_v37  ;;  %v5101_v37 = vld [vmem:[%s7432_s30 + $0xc0] sm:$0xff] }
0x1878   :  { %v2824_v47 = vmul.f32 %v6416_v46, %v6412_v38  ;;  %v5102_v38 = vld [vmem:[%s7432_s30 + $0xc8] sm:$0xff] }
0x1879   :  { %v6241_v39 = vpack.c.bf16 %v5102_v38, %v5101_v37  ;;  %v6279_v38 = vpack.c.bf16 %v5131_v35, %v5130_v36  ;;  %v5162_v36 = vld [vmem:[%s7412_s13 + $0x88] sm:$0xff]  ;;  %v5163_v35 = vld [vmem:[%s7412_s13 + $0x90] sm:$0xff] }
0x187a   :  { %5768 = vmatprep.mubr.msk.f32.mxu1 %vm444_vm3, %v2824_v47 }
0x187b   :  { %5769 = vmatmul.mubr.msk.f32.vlgmr.msra.gmra.mrb[18].mxu1 %vm444_vm3, %v2825_v48 }
0x187c   :  { %5772 = vmatpush3.msra.mxu1 %v5064_v42  ;;  %v5104_v42 = vld [vmem:[%s7432_s30 + $0xd8] sm:$0xff] }
0x187d   :  { %6208 = vmatprep.subr.bf16.mxu1 %v6207_v51  ;;  %v6245_v45 = vpack.c.bf16 %v5104_v42, %v5103_v41 }
0x194e   :  { %v5770_v55 = vpop.f32.mrb[18].mxu1 }
0x194f   :  { %v2898_v56 = vpop.f32.mrb[19].mxu1 }
0x1950   :  { %5773 = vmatprep.mubr.msk.f32.mxu1 %vm356_vm1, %v2898_v56 }
0x1951   :  { %5774 = vmatmul.mubr.msk.f32.vlgmr.msra.gmra.mrb[20].mxu1 %vm356_vm1, %v5770_v55 }
0x1952   :  { %6210 = vmatpush3.bf16.msra.mxu1 %v6207_v51  ;;  %5795 = vmatprep.mubr.msk.f32.mxu1 %vm68_vm0, %v7008_v58 }
0x1953   :  { %6212 = vmatprep.subr.bf16.mxu1 %v6211_v59 }
0x1956   :  { %6214 = vmatpush3.bf16.msra.mxu1 %v6211_v59 }
0x1959   :  { %5796 = vmatmul.mubr.msk.f32.vlgmr.msra.gmra.mrb[22].mxu1 %vm68_vm0, %v7010_v50 }
0x195a   :  { %5813 = vmatprep.mubr.msk.f32.mxu1 %vm356_vm1, %v3069_v28 }
0x1a2c   :  { %v5797_v60 = vpop.f32.mrb[22].mxu1 }
0x1a2d   :  { %v3149_v61 = vpop.f32.mrb[23].mxu1 }
0x1a2e   :  { %v6223_v62 = vpack.c.bf16 %v5797_v60, %v3149_v61 }
0x1a30   :  { %6225 = vmatprep.subr.msk.bf16.mxu1 %vm6630_vm2, %v6223_v62 }
0x1a31   :  { %6228 = vmatpush3.bf16.xpose.msk.msra.mxu1 %vm6630_vm2, %v6223_v62 }
0x1a32   :  { %5823 = vmatprep.subr.mxu1 %v5092_v5 }
0x1a38   :  { %5814 = vmatmul.mubr.msk.f32.vlgmr.msra.gmra.mrb[24].mxu1 %vm356_vm1, %v5786_v27  ;;  %v5098_v27 = vld [vmem:[%s7431_s23 + $0xd8] sm:$0xff] }
0x1a39   :  { %5824 = vmatpush3.msra.mxu1 %v5092_v5  ;;  %v6237_v31 = vpack.c.bf16 %v5098_v27, %v5097_v26  ;;  %v5134_v26 = vld [vmem:[%s7407_s6 + $0xe0] sm:$0xff]  ;;  %v5135_v27 = vld [vmem:[%s7407_s6 + $0xe8] sm:$0xff] }
0x1a3a   :  { %6242 = vmatprep.subr.bf16.mxu1 %v6241_v39 }
0x1b0b   :  { %v5815_v63 = vpop.f32.mrb[24].mxu1 }
0x1b0c   :  { %v3322_v2 = vadd.f32 %v7077_v22, %v5815_v63  ;;  %v3316_v3 = vpop.f32.mrb[25].mxu1 }
0x1b0d   :  { %v3317_v4 = vadd.f32 %v7083_v24, %v3316_v3 }
0x1b0e   :  { %v3328_v7 = vsel %vm444_vm3, %v3322_v2, -inf }
0x1b0f   :  { %3329 = vmax.xlane.f32.xlu1 %v3328_v7  ;;  %v3325_v8 = vsel %vm444_vm3, %v3317_v4, -inf }
0x1b10   :  { %3326 = vmax.xlane.f32.xlu0 %v3325_v8 }
0x1b9c   :  { %v3330_v9 = vpop.xlane.xlu1 %3329 }
0x1b9d   :  { %v3332_v10 = vsub.f32 %v3322_v2, %v3330_v9  ;;  %v3327_v11 = vpop.xlane.xlu0 %3326 }
0x1b9e   :  { %v3331_v12 = vsub.f32 %v3317_v4, %v3327_v11 }
0x1b9f   :  { %v3335_v13 = vmul.f32 1.442695, %v3332_v10 }
0x1ba0   :  { %v3333_v1 = vmul.f32 1.442695, %v3331_v12 }
0x1ba1   :  { %6417 = vpow2.f32 %v3335_v13  ;;  %v5122_v13 = vld [vmem:[%s7431_s23 + $0xe0] sm:$0xff] }
0x1ba2   :  { %6419 = vpow2.f32 %v3333_v1  ;;  %v5123_v1 = vld [vmem:[%s7431_s23 + $0xe8] sm:$0xff] }
0x1bab   :  { %v6418_v0 = vpop.eup %6417 }
0x1bac   :  { %v6420_v16 = vpop.eup %6419  ;;  %v3340_v17 = vsel %vm444_vm3, %v6418_v0, 0.0 }
0x1bad   :  { %3341 = vadd.xlane.f32.xlu1 %v3340_v17  ;;  %v3337_v18 = vsel %vm444_vm3, %v6420_v16, 0.0 }
0x1bae   :  { %3338 = vadd.xlane.f32.xlu0 %v3337_v18 }
0x1c3a   :  { %v3342_v23 = vpop.xlane.xlu1 %3341 }
0x1c3b   :  { %6421 = vrcp.f32 %v3342_v23  ;;  %v3339_v6 = vpop.xlane.xlu0 %3338 }
0x1c3c   :  { %6423 = vrcp.f32 %v3339_v6 }
0x1c45   :  { %v6422_v25 = vpop.eup %6421 }
0x1c46   :  { %v6424_v28 = vpop.eup %6423  ;;  %v3346_v30 = vmul.f32 %v6422_v25, %v6418_v0  ;;  %v6267_v0 = vpack.c.bf16 %v5123_v1, %v5122_v13 }
0x1c47   :  { %v3345_v29 = vmul.f32 %v6424_v28, %v6420_v16  ;;  %v5119_v16 = vld [vmem:[%s7409_s7 + $0x30] sm:$0xff]  ;;  %v6283_v28 = vpack.c.bf16 %v5135_v27, %v5134_v26 }
0x1c49   :  { %5820 = vmatprep.mubr.msk.f32.mxu0 %vm444_vm3, %v3345_v29  ;;  %v5136_v29 = vld [vmem:[%s7407_s6 + $0xf0] sm:$0xff] }
0x1c4a   :  { %5821 = vmatmul.mubr.msk.f32.vlgmr.msra.gmra.mrb[40].mxu0 %vm444_vm3, %v3346_v30  ;;  %v5137_v30 = vld [vmem:[%s7407_s6 + $0xf8] sm:$0xff] }
0x1c4b   :  { %6236 = vmatpush3.bf16.msra.mxu0 %v6233_v21  ;;  %5836 = vmatprep.mubr.msk.f32.mxu0 %vm68_vm0, %v7008_v58  ;;  %v5125_v21 = vld [vmem:[%s7431_s23 + $0xf8] sm:$0xff] }
0x1c4c   :  { %6238 = vmatprep.subr.bf16.mxu0 %v6237_v31  ;;  %v6271_v25 = vpack.c.bf16 %v5125_v21, %v5124_v20 }
0x1c4f   :  { %6240 = vmatpush3.bf16.msra.mxu0 %v6237_v31  ;;  %v6287_v31 = vpack.c.bf16 %v5137_v30, %v5136_v29  ;;  %v5154_v29 = vld [vmem:[%s7411_s11 + $0x28] sm:$0xff] }
0x1c50   :  { %6250 = vmatprep.subr.bf16.mxu0 %v6249_v34 }
0x1c52   :  { %5837 = vmatmul.mubr.msk.f32.vlgmr.msra.gmra.mrb[42].mxu0 %vm68_vm0, %v7010_v50 }
0x1c53   :  { %6252 = vmatpush3.bf16.msra.mxu0 %v6249_v34  ;;  %5858 = vmatprep.mubr.msk.f32.mxu0 %vm68_vm0, %v7008_v58  ;;  %v6275_v34 = vpack.c.bf16 %v5129_v33, %v5128_v32  ;;  %v5156_v32 = vld [vmem:[%s7411_s11 + $0x38] sm:$0xff] }
0x1c54   :  { %6254 = vmatprep.subr.bf16.mxu0 %v6253_v40 }
0x1c57   :  { %6256 = vmatpush3.bf16.msra.mxu0 %v6253_v40 }
0x1c5a   :  { %5859 = vmatmul.mubr.msk.f32.vlgmr.msra.gmra.mrb[44].mxu0 %vm68_vm0, %v7010_v50 }
0x1d1d   :  { %v5822_v43 = vpop.f32.mrb[40].mxu0 }
0x1d1e   :  { %v3419_v44 = vpop.f32.mrb[41].mxu0 }
0x1d1f   :  { %5825 = vmatprep.mubr.msk.f32.mxu1 %vm356_vm1, %v3419_v44 }
0x1d20   :  { %5826 = vmatmul.mubr.msk.f32.vlgmr.msra.gmra.mrb[20].mxu1 %vm356_vm1, %v5822_v43 }
0x1d21   :  { %6244 = vmatpush3.bf16.msra.mxu1 %v6241_v39  ;;  %5847 = vmatprep.mubr.msk.f32.mxu1 %vm68_vm0, %v7008_v58 }
0x1d22   :  { %6246 = vmatprep.subr.bf16.mxu1 %v6245_v45 }
0x1d25   :  { %v5838_v46 = vpop.f32.mrb[42].mxu0  ;;  %6248 = vmatpush3.bf16.msra.mxu1 %v6245_v45 }
0x1d26   :  { %v3584_v47 = vpop.f32.mrb[43].mxu0 }
0x1d28   :  { %5848 = vmatmul.mubr.msk.f32.vlgmr.msra.gmra.mrb[26].mxu1 %vm68_vm0, %v7010_v50 }
0x1d29   :  { %5865 = vmatprep.mubr.msk.f32.mxu1 %vm356_vm1, %v3584_v47 }
0x1d2d   :  { %v5860_v48 = vpop.f32.mrb[44].mxu0 }
0x1d2e   :  { %v3744_v49 = vpop.f32.mrb[45].mxu0 }
0x1d2f   :  { %v6263_v57 = vpack.c.bf16 %v5860_v48, %v3744_v49 }
0x1d31   :  { %6264 = vmatprep.subr.bf16.mxu0 %v6263_v57 }
0x1d32   :  { %6266 = vmatpush3.bf16.msra.mxu0 %v6263_v57 }
0x1d33   :  { %6268 = vmatprep.subr.bf16.mxu0 %v6267_v0 }
0x1dfb   :  { %v5849_v51 = vpop.f32.mrb[26].mxu1 }
0x1dfc   :  { %v3664_v53 = vpop.f32.mrb[27].mxu1 }
0x1dfd   :  { %v6257_v54 = vpack.c.bf16 %v5849_v51, %v3664_v53 }
0x1dff   :  { %6259 = vmatprep.subr.msk.bf16.mxu1 %vm6630_vm2, %v6257_v54 }
0x1e00   :  { %6262 = vmatpush3.bf16.xpose.msk.msra.mxu1 %vm6630_vm2, %v6257_v54 }
0x1e01   :  { %5875 = vmatprep.subr.mxu1 %v5119_v16 }
0x1e07   :  { %5866 = vmatmul.mubr.msk.f32.vlgmr.msra.gmra.mrb[28].mxu1 %vm356_vm1, %v5838_v46 }
0x1e08   :  { %5876 = vmatpush3.msra.mxu1 %v5119_v16 }
0x1e09   :  { %6276 = vmatprep.subr.bf16.mxu1 %v6275_v34 }
0x1eda   :  { %v5867_v55 = vpop.f32.mrb[28].mxu1 }
0x1edb   :  { %v3837_v56 = vadd.f32 %v7077_v22, %v5867_v55  ;;  %v3831_v59 = vpop.f32.mrb[29].mxu1 }
0x1edc   :  { %v3832_v60 = vadd.f32 %v7083_v24, %v3831_v59 }
0x1edd   :  { %v3843_v61 = vsel %vm444_vm3, %v3837_v56, -inf }
0x1ede   :  { %3844 = vmax.xlane.f32.xlu1 %v3843_v61  ;;  %v3840_v62 = vsel %vm444_vm3, %v3832_v60, -inf }
0x1edf   :  { %3841 = vmax.xlane.f32.xlu0 %v3840_v62  ;;  %v5146_v62 = vld [vmem:[%s7409_s7 + $0x38] sm:$0xff] }
0x1f6b   :  { %v3845_v63 = vpop.xlane.xlu1 %3844 }
0x1f6c   :  { %v3847_v2 = vsub.f32 %v3837_v56, %v3845_v63  ;;  %v3842_v3 = vpop.xlane.xlu0 %3841 }
0x1f6d   :  { %v3846_v4 = vsub.f32 %v3832_v60, %v3842_v3 }
0x1f6e   :  { %v3850_v7 = vmul.f32 1.442695, %v3847_v2 }
0x1f6f   :  { %v3848_v8 = vmul.f32 1.442695, %v3846_v4 }
0x1f70   :  { %6425 = vpow2.f32 %v3850_v7 }
0x1f71   :  { %6427 = vpow2.f32 %v3848_v8 }
0x1f7a   :  { %v6426_v9 = vpop.eup %6425 }
0x1f7b   :  { %v6428_v10 = vpop.eup %6427  ;;  %v3855_v11 = vsel %vm444_vm3, %v6426_v9, 0.0 }
0x1f7c   :  { %3856 = vadd.xlane.f32.xlu1 %v3855_v11  ;;  %v3852_v12 = vsel %vm444_vm3, %v6428_v10, 0.0  ;;  %v5067_v11 = vld [vmem:[%s7410_s8 + $0x1] ss:$0 sm:$0xff] }
0x1f7d   :  { %3853 = vadd.xlane.f32.xlu0 %v3852_v12 }
0x2009   :  { %v3857_v17 = vpop.xlane.xlu1 %3856 }
0x200a   :  { %6429 = vrcp.f32 %v3857_v17  ;;  %v3854_v18 = vpop.xlane.xlu0 %3853 }
0x200b   :  { %6431 = vrcp.f32 %v3854_v18 }
0x2014   :  { %v6430_v19 = vpop.eup %6429 }
0x2015   :  { %v6432_v5 = vpop.eup %6431  ;;  %v3861_v6 = vmul.f32 %v6430_v19, %v6426_v9 }
0x2016   :  { %v3860_v23 = vmul.f32 %v6432_v5, %v6428_v10 }
0x2018   :  { %5872 = vmatprep.mubr.msk.f32.mxu0 %vm444_vm3, %v3860_v23 }
0x2019   :  { %5873 = vmatmul.mubr.msk.f32.vlgmr.msra.gmra.mrb[46].mxu0 %vm444_vm3, %v3861_v6 }
0x201a   :  { %6270 = vmatpush3.bf16.msra.mxu0 %v6267_v0  ;;  %5888 = vmatprep.mubr.msk.f32.mxu0 %vm68_vm0, %v7008_v58 }
0x201b   :  { %6272 = vmatprep.subr.bf16.mxu0 %v6271_v25 }
0x201e   :  { %6274 = vmatpush3.bf16.msra.mxu0 %v6271_v25 }
0x201f   :  { %6284 = vmatprep.subr.bf16.mxu0 %v6283_v28 }
0x2021   :  { %5889 = vmatmul.mubr.msk.f32.vlgmr.msra.gmra.mrb[48].mxu0 %vm68_vm0, %v7010_v50 }
0x2022   :  { %6286 = vmatpush3.bf16.msra.mxu0 %v6283_v28  ;;  %5910 = vmatprep.mubr.msk.f32.mxu0 %vm68_vm0, %v7008_v58  ;;  %v5153_v28 = vld [vmem:[%s7411_s11 + $0x20] sm:$0xff] }
0x2023   :  { %6288 = vmatprep.subr.bf16.mxu0 %v6287_v31  ;;  %v6301_v30 = vpack.c.bf16 %v5154_v29, %v5153_v28 }
0x2026   :  { %6290 = vmatpush3.bf16.msra.mxu0 %v6287_v31  ;;  %v5155_v31 = vld [vmem:[%s7411_s11 + $0x30] sm:$0xff] }
0x2027   :  { %v6305_v33 = vpack.c.bf16 %v5156_v32, %v5155_v31 }
0x2029   :  { %5911 = vmatmul.mubr.msk.f32.vlgmr.msra.gmra.mrb[50].mxu0 %vm68_vm0, %v7010_v50 }
0x20ec   :  { %v5874_v40 = vpop.f32.mrb[46].mxu0 }
0x20ed   :  { %v3934_v37 = vpop.f32.mrb[47].mxu0 }
0x20ee   :  { %5877 = vmatprep.mubr.msk.f32.mxu1 %vm356_vm1, %v3934_v37  ;;  %v5164_v37 = vld [vmem:[%s7412_s13 + $0x98] sm:$0xff] }
0x20ef   :  { %5878 = vmatmul.mubr.msk.f32.vlgmr.msra.gmra.mrb[20].mxu1 %vm356_vm1, %v5874_v40 }
0x20f0   :  { %6278 = vmatpush3.bf16.msra.mxu1 %v6275_v34  ;;  %5899 = vmatprep.mubr.msk.f32.mxu1 %vm68_vm0, %v7008_v58  ;;  %v5161_v34 = vld [vmem:[%s7412_s13 + $0x80] sm:$0xff] }
0x20f1   :  { %6280 = vmatprep.subr.bf16.mxu1 %v6279_v38  ;;  %v6309_v40 = vpack.c.bf16 %v5162_v36, %v5161_v34 }
0x20f4   :  { %v5890_v39 = vpop.f32.mrb[48].mxu0  ;;  %6282 = vmatpush3.bf16.msra.mxu1 %v6279_v38  ;;  %v6313_v38 = vpack.c.bf16 %v5164_v37, %v5163_v35 }
0x20f5   :  { %v4099_v41 = vpop.f32.mrb[49].mxu0 }
0x20f7   :  { %5900 = vmatmul.mubr.msk.f32.vlgmr.msra.gmra.mrb[30].mxu1 %vm68_vm0, %v7010_v50 }
0x20f8   :  { %5917 = vmatprep.mubr.msk.f32.mxu1 %vm356_vm1, %v4099_v41  ;;  %v5166_v41 = vld [vmem:[%s7412_s13 + $0xa8] sm:$0xff] }
0x20fc   :  { %v5912_v42 = vpop.f32.mrb[50].mxu0 }
0x20fd   :  { %v4259_v43 = vpop.f32.mrb[51].mxu0 }
0x20fe   :  { %v6297_v44 = vpack.c.bf16 %v5912_v42, %v4259_v43  ;;  %v5167_v43 = vld [vmem:[%s7412_s13 + $0xb0] sm:$0xff] }
0x2100   :  { %6298 = vmatprep.subr.bf16.mxu0 %v6297_v44 }
0x2101   :  { %6300 = vmatpush3.bf16.msra.mxu0 %v6297_v44  ;;  %v5168_v44 = vld [vmem:[%s7412_s13 + $0xb8] sm:$0xff] }
0x2102   :  { %6302 = vmatprep.subr.bf16.mxu0 %v6301_v30 }
0x21ca   :  { %v5901_v45 = vpop.f32.mrb[30].mxu1 }
0x21cb   :  { %v4179_v46 = vpop.f32.mrb[31].mxu1 }
0x21cc   :  { %v6291_v47 = vpack.c.bf16 %v5901_v45, %v4179_v46  ;;  %v6321_v45 = vpack.c.bf16 %v5168_v44, %v5167_v43  ;;  %v5169_v46 = vld [vmem:[%s7412_s13 + $0xc0] sm:$0xff] }
0x21ce   :  { %6293 = vmatprep.subr.msk.bf16.mxu1 %vm6630_vm2, %v6291_v47 }
0x21cf   :  { %6296 = vmatpush3.bf16.xpose.msk.msra.mxu1 %vm6630_vm2, %v6291_v47  ;;  %v5170_v47 = vld [vmem:[%s7412_s13 + $0xc8] sm:$0xff] }
0x21d0   :  { %5927 = vmatprep.subr.mxu1 %v5146_v62 }
0x21d6   :  { %5918 = vmatmul.mubr.msk.f32.vlgmr.msra.gmra.mrb[32].mxu1 %vm356_vm1, %v5890_v39  ;;  %v5165_v39 = vld [vmem:[%s7412_s13 + $0xa0] sm:$0xff] }
0x21d7   :  { %5928 = vmatpush3.msra.mxu1 %v5146_v62  ;;  %v6317_v42 = vpack.c.bf16 %v5166_v41, %v5165_v39  ;;  %v4836_v39 = vld [vmem:[%s7417_s17 + $0x18] sm:$0xff] }
0x21d8   :  { %6310 = vmatprep.subr.bf16.mxu1 %v6309_v40 }
0x22a9   :  { %v5919_v58 = vpop.f32.mrb[32].mxu1 }
0x22aa   :  { %v4352_v50 = vadd.f32 %v7077_v22, %v5919_v58  ;;  %v4346_v48 = vpop.f32.mrb[33].mxu1  ;;  %v6325_v58 = vpack.c.bf16 %v5170_v47, %v5169_v46 }
0x22ab   :  { %v4347_v49 = vadd.f32 %v7083_v24, %v4346_v48  ;;  %v5172_v48 = vld [vmem:[%s7412_s13 + $0xd8] sm:$0xff] }
0x22ac   :  { %v4358_v57 = vsel %vm444_vm3, %v4352_v50, -inf }
0x22ad   :  { %4359 = vmax.xlane.f32.xlu1 %v4358_v57  ;;  %v4355_v51 = vsel %vm444_vm3, %v4347_v49, -inf  ;;  %v5173_v57 = vld [vmem:[%s7412_s13 + $0xe0] sm:$0xff] }
0x22ae   :  { %4356 = vmax.xlane.f32.xlu0 %v4355_v51  ;;  %v5174_v51 = vld [vmem:[%s7412_s13 + $0xe8] sm:$0xff] }
0x233a   :  { %v4360_v53 = vpop.xlane.xlu1 %4359 }
0x233b   :  { %v4362_v54 = vsub.f32 %v4352_v50, %v4360_v53  ;;  %v4357_v55 = vpop.xlane.xlu0 %4356  ;;  %v5171_v50 = vld [vmem:[%s7412_s13 + $0xd0] sm:$0xff]  ;;  %v6333_v53 = vpack.c.bf16 %v5174_v51, %v5173_v57  ;;  %v5180_v51 = vld [vmem:[%s7419_s16] ss:$0 sm:$0xff] }
0x233c   :  { %v4361_v56 = vsub.f32 %v4347_v49, %v4357_v55  ;;  %v6329_v49 = vpack.c.bf16 %v5172_v48, %v5171_v50  ;;  %v5179_v50 = vld [vmem:[%s7418_s15] ss:$0 sm:$0xff] }
0x233d   :  { %v4365_v52 = vmul.f32 1.442695, %v4362_v54 }
0x233e   :  { %v4363_v59 = vmul.f32 1.442695, %v4361_v56 }
0x233f   :  { %6433 = vpow2.f32 %v4365_v52 }
0x2340   :  { %6435 = vpow2.f32 %v4363_v59 }
0x2349   :  { %v6434_v60 = vpop.eup %6433 }
0x234a   :  { %v6436_v61 = vpop.eup %6435  ;;  %v4370_v22 = vsel %vm444_vm3, %v6434_v60, 0.0 }
0x234b   :  { %4371 = vadd.xlane.f32.xlu1 %v4370_v22  ;;  %v4367_v24 = vsel %vm444_vm3, %v6436_v61, 0.0  ;;  %v5151_v22 = vld [vmem:[%s7413_s9 + $0x1] ss:$0 sm:$0xff] }
0x234c   :  { %4368 = vadd.xlane.f32.xlu0 %v4367_v24 }
0x23d8   :  { %v4372_v63 = vpop.xlane.xlu1 %4371 }
0x23d9   :  { %6437 = vrcp.f32 %v4372_v63  ;;  %v4369_v2 = vpop.xlane.xlu0 %4368 }
0x23da   :  { %6439 = vrcp.f32 %v4369_v2  ;;  %v5152_v2 = vld [vmem:[%s7414_s10 + $0x1] ss:$0 sm:$0xff] }
0x23e3   :  { %v6438_v3 = vpop.eup %6437 }
0x23e4   :  { %v6440_v4 = vpop.eup %6439  ;;  %v4376_v8 = vmul.f32 %v6438_v3, %v6434_v60 }
0x23e5   :  { %v4375_v7 = vmul.f32 %v6440_v4, %v6436_v61 }
0x23e7   :  { %5924 = vmatprep.mubr.msk.f32.mxu0 %vm444_vm3, %v4375_v7 }
0x23e8   :  { %5925 = vmatmul.mubr.msk.f32.vlgmr.msra.gmra.mrb[52].mxu0 %vm444_vm3, %v4376_v8 }
0x23e9   :  { %6304 = vmatpush3.bf16.msra.mxu0 %v6301_v30 }
0x23ea   :  { %6306 = vmatprep.subr.bf16.mxu0 %v6305_v33 }
0x23ed   :  { %6308 = vmatpush3.bf16.msra.mxu0 %v6305_v33 }
0x24bb   :  { %v5926_v9 = vpop.f32.mrb[52].mxu0 }
0x24bc   :  { %v4449_v10 = vpop.f32.mrb[53].mxu0 }
0x24bd   :  { %5929 = vmatprep.mubr.msk.f32.mxu1 %vm356_vm1, %v4449_v10  ;;  %v5176_v10 = vld [vmem:[%s7412_s13 + $0xf8] sm:$0xff] }
0x24be   :  { %5930 = vmatmul.mubr.msk.f32.vlgmr.msra.gmra.mrb[20].mxu1 %vm356_vm1, %v5926_v9  ;;  %v5175_v9 = vld [vmem:[%s7412_s13 + $0xf0] sm:$0xff] }
0x24bf   :  { %6312 = vmatpush3.bf16.msra.mxu1 %v6309_v40  ;;  %v4834_v40 = vld [vmem:[%s7417_s17 + $0x8] sm:$0xff] }
0x24c0   :  { %6314 = vmatprep.subr.bf16.mxu1 %v6313_v38 }
0x24c3   :  { %6316 = vmatpush3.bf16.msra.mxu1 %v6313_v38  ;;  %v4835_v38 = vld [vmem:[%s7417_s17 + $0x10] sm:$0xff] }
0x24c4   :  { %6318 = vmatprep.subr.bf16.mxu1 %v6317_v42  ;;  %v6345_v41 = vpack.c.bf16 %v4836_v39, %v4835_v38 }
0x24c7   :  { %6320 = vmatpush3.bf16.msra.mxu1 %v6317_v42 }
0x24c8   :  { %6322 = vmatprep.subr.bf16.mxu1 %v6321_v45 }
0x24cb   :  { %6324 = vmatpush3.bf16.msra.mxu1 %v6321_v45 }
0x24cc   :  { %6326 = vmatprep.subr.bf16.mxu1 %v6325_v58 }
0x24cf   :  { %6328 = vmatpush3.bf16.msra.mxu1 %v6325_v58 }
0x24d0   :  { %6330 = vmatprep.subr.bf16.mxu1 %v6329_v49 }
0x24d3   :  { %6332 = vmatpush3.bf16.msra.mxu1 %v6329_v49 }
0x24d4   :  { %6334 = vmatprep.subr.bf16.mxu1 %v6333_v53 }
0x24d7   :  { %6336 = vmatpush3.bf16.msra.mxu1 %v6333_v53 }
0x2591   :  { %v5931_v12 = vpop.f32.mrb[20].mxu1 }
0x2592   :  { %v6351_v13 = vadd.f32 %v5931_v12, %v5067_v11  ;;  %v4532_v1 = vpop.f32.mrb[21].mxu1  ;;  %v5158_v12 = vld [vmem:[%s7415_s12 + $0x1] ss:$0 sm:$0xff] }
0x2593   :  { %v6352_v0 = vadd.f32 %v5067_v11, %v4532_v1  ;;  %v6337_v11 = vpack.c.bf16 %v5176_v10, %v5175_v9 }
0x2594   :  { %v7270_v16 = vadd.f32 %v6351_v13, %v6965_v14 }
0x2595   :  { %v7273_v17 = vadd.f32 %v6352_v0, %v6968_v15  ;;  %6338 = vmatprep.subr.bf16.mxu1 %v6337_v11 }
0x2596   :  { %v4552_v18 = vsel %vm68_vm0, %v7270_v16, 0.0  ;;  %6340 = vmatpush3.bf16.msra.mxu1 %v6337_v11 }
0x2597   :  { %4553 = vadd.xlane.f32.xlu1 %v4552_v18  ;;  %v4549_v19 = vsel %vm68_vm0, %v7273_v17, 0.0 }
0x2598   :  { %4550 = vadd.xlane.f32.xlu0 %v4549_v19 }
0x2624   :  { %v4554_v20 = vpop.xlane.xlu1 %4553 }
0x2625   :  { %v4556_v21 = vmul.f32 0.03125, %v4554_v20  ;;  %v4551_v5 = vpop.xlane.xlu0 %4550 }
0x2626   :  { %v4555_v23 = vmul.f32 0.03125, %v4551_v5 }
0x2627   :  { %v7280_v6 = vsub.f32 %v7270_v16, %v4556_v21  ;;  %v5178_v21 = vld [vmem:[%s7416_s14 + $0x1] ss:$0 sm:$0xff] }
0x2628   :  { %v7283_v14 = vsub.f32 %v7273_v17, %v4555_v23 }
0x2629   :  { %v4560_v15 = vmul.f32 %v7280_v6, %v7280_v6 }
0x262a   :  { %v4559_v25 = vmul.f32 %v7283_v14, %v7283_v14 }
0x262b   :  { %v4564_v26 = vsel %vm68_vm0, %v4560_v15, 0.0 }
0x262c   :  { %4565 = vadd.xlane.f32.xlu1 %v4564_v26  ;;  %v4561_v27 = vsel %vm68_vm0, %v4559_v25, 0.0 }
0x262d   :  { %4562 = vadd.xlane.f32.xlu0 %v4561_v27 }
0x26b9   :  { %v4566_v54 = vpop.xlane.xlu1 %4565 }
0x26ba   :  { %v4568_v55 = vmul.f32 0.03125, %v4566_v54  ;;  %v4563_v56 = vpop.xlane.xlu0 %4562 }
0x26bb   :  { %v4567_v52 = vmul.f32 0.03125, %v4563_v56 }
0x26bc   :  { %v4570_v59 = vadd.f32 1e-05, %v4568_v55 }
0x26bd   :  { %v4569_v60 = vadd.f32 1e-05, %v4567_v52  ;;  %v5181_v52 = vld [vmem:[%s7420_s18] ss:$0 sm:$0xff] }
0x26be   :  { %6441 = vrsqrt.f32 %v4570_v59 }
0x26bf   :  { %6443 = vrsqrt.f32 %v4569_v60 }
0x26c8   :  { %v6442_v61 = vpop.eup %6441 }
0x26c9   :  { %v6444_v24 = vpop.eup %6443  ;;  %v4574_v62 = vmul.f32 %v6442_v61, %v7280_v6 }
0x26ca   :  { %v4573_v63 = vmul.f32 %v6444_v24, %v7283_v14 }
0x26cb   :  { %v4582_v3 = vmul.f32 %v5151_v22, %v4574_v62 }
0x26cc   :  { %v4581_v4 = vmul.f32 %v5151_v22, %v4573_v63 }
0x26cd   :  { %v4590_v8 = vadd.f32 %v5152_v2, %v4582_v3 }
0x26ce   :  { %v4589_v7 = vadd.f32 %v5152_v2, %v4581_v4 }
0x26d0   :  { %5940 = vmatprep.mubr.msk.f32.mxu0 %vm68_vm0, %v4589_v7 }
0x26d1   :  { %5941 = vmatmul.mubr.msk.f32.vlgmr.msra.gmra.mrb[54].mxu0 %vm68_vm0, %v4590_v8 }
0x27a4   :  { %v5942_v13 = vpop.f32.mrb[54].mxu0 }
0x27a5   :  { %v4682_v1 = vadd.f32 %v5942_v13, %v5158_v12  ;;  %v4676_v0 = vpop.f32.mrb[55].mxu0 }
0x27a6   :  { %v4677_v18 = vadd.f32 %v5158_v12, %v4676_v0 }
0x27a7   :  { %v4686_v20 = vmax.f32 %v4682_v1, 0.0 }
0x27a8   :  { %v4685_v19 = vmax.f32 %v4677_v18, 0.0 }
0x27aa   :  { %5975 = vmatprep.mubr.f32.mxu1 %v4685_v19 }
0x27ab   :  { %5976 = vmatmul.mubr.f32.vlgmr.msra.gmra.mrb[34].mxu1 %v4686_v20 }
0x287e   :  { %v5977_v5 = vpop.f32.mrb[34].mxu1 }
0x287f   :  { %v4784_v23 = vadd.f32 %v5977_v5, %v5178_v21  ;;  %v4778_v6 = vpop.f32.mrb[35].mxu1 }
0x2880   :  { %v4779_v14 = vadd.f32 %v5178_v21, %v4778_v6 }
0x2881   :  { %v4788_v15 = vadd.f32 %v4784_v23, %v7270_v16 }
0x2882   :  { %v4787_v25 = vadd.f32 %v4779_v14, %v7273_v17  ;;  %v4833_v17 = vld [vmem:[%s7417_s17] sm:$0xff] }
0x2883   :  { %v4794_v26 = vsel %vm68_vm0, %v4788_v15, 0.0  ;;  %v6341_v37 = vpack.c.bf16 %v4834_v40, %v4833_v17 }
0x2884   :  { %4795 = vadd.xlane.f32.xlu1 %v4794_v26  ;;  %v4791_v27 = vsel %vm68_vm0, %v4787_v25, 0.0 }
0x2885   :  { %4792 = vadd.xlane.f32.xlu0 %v4791_v27  ;;  %6342 = vmatprep.subr.bf16.mxu0 %v6341_v37 }
0x2886   :  { %6344 = vmatpush3.bf16.msra.mxu0 %v6341_v37 }
0x2887   :  { %6346 = vmatprep.subr.bf16.mxu0 %v6345_v41 }
0x288a   :  { %6348 = vmatpush3.bf16.msra.mxu0 %v6345_v41 }
0x2911   :  { %v4796_v28 = vpop.xlane.xlu1 %4795 }
0x2912   :  { %v4798_v29 = vmul.f32 0.03125, %v4796_v28  ;;  %v4793_v30 = vpop.xlane.xlu0 %4792 }
0x2913   :  { %v4797_v31 = vmul.f32 0.03125, %v4793_v30 }
0x2914   :  { %v4800_v32 = vsub.f32 %v4788_v15, %v4798_v29 }
0x2915   :  { %v4799_v33 = vsub.f32 %v4787_v25, %v4797_v31 }
0x2916   :  { %v4802_v34 = vmul.f32 %v4800_v32, %v4800_v32 }
0x2917   :  { %v4801_v36 = vmul.f32 %v4799_v33, %v4799_v33 }
0x2918   :  { %v4806_v35 = vsel %vm68_vm0, %v4802_v34, 0.0 }
0x2919   :  { %4807 = vadd.xlane.f32.xlu1 %v4806_v35  ;;  %v4803_v16 = vsel %vm68_vm0, %v4801_v36, 0.0 }
0x291a   :  { %4804 = vadd.xlane.f32.xlu0 %v4803_v16 }
0x29a6   :  { %v4808_v42 = vpop.xlane.xlu1 %4807 }
0x29a7   :  { %v4810_v43 = vmul.f32 0.03125, %v4808_v42  ;;  %v4805_v44 = vpop.xlane.xlu0 %4804 }
0x29a8   :  { %v4809_v45 = vmul.f32 0.03125, %v4805_v44 }
0x29a9   :  { %v4812_v46 = vadd.f32 1e-05, %v4810_v43 }
0x29aa   :  { %v4811_v47 = vadd.f32 1e-05, %v4809_v45 }
0x29ab   :  { %6445 = vrsqrt.f32 %v4812_v46 }
0x29ac   :  { %6447 = vrsqrt.f32 %v4811_v47 }
0x29b5   :  { %v6446_v58 = vpop.eup %6445 }
0x29b6   :  { %v6448_v48 = vpop.eup %6447  ;;  %v4816_v49 = vmul.f32 %v6446_v58, %v4800_v32 }
0x29b7   :  { %v4815_v57 = vmul.f32 %v6448_v48, %v4799_v33 }
0x29b8   :  { %v4824_v53 = vmul.f32 %v5179_v50, %v4816_v49 }
0x29b9   :  { %v4823_v54 = vmul.f32 %v5179_v50, %v4815_v57 }
0x29ba   :  { %v4832_v56 = vadd.f32 %v5180_v51, %v4824_v53 }
0x29bb   :  { %v4831_v55 = vadd.f32 %v5180_v51, %v4823_v54 }
0x29bd   :  { %5986 = vmatprep.mubr.msk.f32.mxu0 %vm68_vm0, %v4831_v55 }
0x29be   :  { %5987 = vmatmul.mubr.msk.f32.vlgmr.msra.gmra.mrb[56].mxu0 %vm68_vm0, %v4832_v56 }
0x2a91   :  { %v5988_v59 = vpop.f32.mrb[56].mxu0 }
0x2a92   :  { %v4922_v60 = vadd.f32 %v5988_v59, %v5181_v52  ;;  %v4916_v61 = vpop.f32.mrb[57].mxu0 }
0x2a93   :  { %v4917_v22 = vadd.f32 %v5181_v52, %v4916_v61 }
0x2a94   :  { %4926 = vst [vmem:[%s7421_s19 + $0x8] sm:$0xff] %v4922_v60 }
0x2a95   :  { %4925 = vst [vmem:[%s7421_s19] sm:$0xff] %v4917_v22 }

</bundles_post_ra>
